<compile_context>
chip_gen: v5e
topology: v5e:2x2
jax: 0.10.0
libtpu: 0.0.40
codegen_flags: <defaults>
</compile_context>

<pallas_src>
from functools import partial

import jax
import jax.numpy as jnp
from jax.experimental import pallas as pl
from jax.experimental.pallas import tpu as pltpu


# -----------------------------------------------------------------------------
# Fused kernel: per (batch-tile, time-chunk) grid cell.
# -----------------------------------------------------------------------------
def fused_kernel(x_ref, wih_ref, b_ref, whh_ref, hwcw_ref, cb_ref, out_ref,
                 h_sc, c_sc, gxs_sc, hist_sc, m_sc, d_sc, n_sc):
    # x_ref    : (Tc, bt, E)    embedded inputs for this time chunk (f32)
    # wih_ref  : (E, 4*Hp)      input->gate weights (compute dtype)
    # b_ref    : (1, 4*Hp)      b_ih + b_hh, per-gate zero-padded (f32)
    # whh_ref  : (Hp, 4*Hp)     recurrent weights (compute dtype)
    # hwcw_ref : (Hp, 2*Wp)     [H.weight^T | hidden2code.weight^T] (compute dtype)
    # cb_ref   : (1, Wp)        hidden2code.bias (f32)
    # out_ref  : (bt, Wp)       sigmoid scores
    # scratch  : h/c (bt,Hp), chunk input-gates (Tc,bt,4Hp), chunk h history
    #            (Tc,bt,Hp), online-softmax running max/denom/numer (bt,Wp)
    Tc, bt, E = x_ref.shape
    Hp = h_sc.shape[1]
    G = gxs_sc.shape[2]              # 4 * Hp
    Wp = out_ref.shape[1]
    cdt = whh_ref.dtype              # matmul-operand dtype (f32 or bf16)

    t = pl.program_id(1)
    nt = pl.num_programs(1)

    @pl.when(t == 0)
    def _init():
        # Fresh per-batch-tile state (scratch persists across grid steps).
        h_sc[...] = jnp.zeros_like(h_sc)
        c_sc[...] = jnp.zeros_like(c_sc)
        m_sc[...] = jnp.full_like(m_sc, -1e30)   # finite "-inf" (no NaN algebra)
        d_sc[...] = jnp.zeros_like(d_sc)
        n_sc[...] = jnp.zeros_like(n_sc)

    def _sigmoid(v):
        # One EUP push (tanh) instead of exp + reciprocal.
        return 0.5 * jnp.tanh(0.5 * v) + 0.5

    # --- hoisted input projection: ONE MXU matmul per chunk (off the serial
    #     recurrence path), staged in VMEM scratch -----------------------------
    x_c = x_ref[...].reshape(Tc * bt, E)
    gx_c = jnp.dot(x_c.astype(cdt), wih_ref[...],
                   preferred_element_type=jnp.float32) + b_ref[...]
    gxs_sc[...] = gx_c.reshape(Tc, bt, G)

    whh = whh_ref[...]

    # --- serial recurrence over the chunk; h/c carried in vregs ---------------
    def step(k, carry):
        h, c = carry
        gates = gxs_sc[k] + jnp.dot(h.astype(cdt), whh,
                                    preferred_element_type=jnp.float32)
        # Gate slices are 128-lane-aligned (H zero-padded to Hp = k*128):
        # no XLU relayout on the critical path.  PyTorch gate order i, f, g, o.
        i = _sigmoid(gates[:, 0 * Hp:1 * Hp])
        f = _sigmoid(gates[:, 1 * Hp:2 * Hp])
        g = jnp.tanh(gates[:, 2 * Hp:3 * Hp])
        o = _sigmoid(gates[:, 3 * Hp:4 * Hp])
        c = f * c + i * g
        h = o * jnp.tanh(c)
        hist_sc[k] = h
        return (h, c)

    h_fin, c_fin = jax.lax.fori_loop(0, Tc, step, (h_sc[...], c_sc[...]),
                                     unroll=min(Tc, 8))
    h_sc[...] = h_fin
    c_sc[...] = c_fin

    # --- deferred attention/head projections: one big lane-dense matmul -------
    proj = jnp.dot(hist_sc[...].reshape(Tc * bt, Hp).astype(cdt), hwcw_ref[...],
                   preferred_element_type=jnp.float32).reshape(Tc, bt, 2 * Wp)
    s_c = proj[:, :, :Wp]            # attention logits  Hw . h    (Tc, bt, Wp)
    p_c = proj[:, :, Wp:]            # head projections  cw . h    (Tc, bt, Wp)

    # --- online (flash-style) softmax over time -------------------------------
    m_old = m_sc[...]
    m_new = jnp.maximum(m_old, jnp.max(s_c, axis=0))
    scale = jnp.exp(m_old - m_new)
    e = jnp.exp(s_c - m_new[None, :, :])
    d_sc[...] = scale * d_sc[...] + jnp.sum(e, axis=0)
    n_sc[...] = scale * n_sc[...] + jnp.sum(e * p_c, axis=0)
    m_sc[...] = m_new

    @pl.when(t == nt - 1)
    def _finalize():
        out = n_sc[...] / d_sc[...] + cb_ref[...]
        out_ref[...] = _sigmoid(out).astype(out_ref.dtype)


# -----------------------------------------------------------------------------
# pallas_call wrapper
# -----------------------------------------------------------------------------
def _vmem_estimate_bytes(Tc, bt, E, Hp, Wp, cbytes):
    G = 4 * Hp
    blocks = 2 * (Tc * bt * E * 4            # x chunk (f32), double-buffered
                  + E * G * cbytes           # wih
                  + G * 4                    # bias
                  + Hp * G * cbytes          # whh
                  + Hp * 2 * Wp * cbytes     # hwcw
                  + Wp * 4                   # cb
                  + bt * Wp * 4)             # out
    scratch = (2 * bt * Hp * 4               # h, c
               + Tc * bt * G * 4             # chunk input gates
               + Tc * bt * Hp * 4            # chunk h history
               + 3 * bt * Wp * 4)            # online-softmax stats
    return blocks + scratch


def _lstmattn_pallas(x_tm, wih, bias, whh, hwcw, cb, *, batch_tile, time_chunk):
    S, Bp, E = x_tm.shape
    Hp, G = whh.shape
    Wp = cb.shape[1]
    bt, Tc = batch_tile, time_chunk
    nb, nt = Bp // bt, S // Tc
    cbytes = jnp.dtype(whh.dtype).itemsize

    est = _vmem_estimate_bytes(Tc, bt, E, Hp, Wp, cbytes)
    # Explicit budget (v7x has only 64 MiB/TC); generous floor keeps default-ish
    # behaviour for small problems.
    vmem_limit = int(min(max(4 * est, 32 * 1024 * 1024), 64 * 1024 * 1024))

    return pl.pallas_call(
        fused_kernel,
        out_shape=jax.ShapeDtypeStruct((Bp, Wp), jnp.float32),
        grid_spec=pltpu.PrefetchScalarGridSpec(
            num_scalar_prefetch=0,
            grid=(nb, nt),
            in_specs=[
                pl.BlockSpec((Tc, bt, E), lambda b, t: (t, b, 0)),   # x chunk
                pl.BlockSpec((E, G), lambda b, t: (0, 0)),           # W_ih^T
                pl.BlockSpec((1, G), lambda b, t: (0, 0)),           # bias
                pl.BlockSpec((Hp, G), lambda b, t: (0, 0)),          # W_hh^T
                pl.BlockSpec((Hp, 2 * Wp), lambda b, t: (0, 0)),     # [Hw^T|cw^T]
                pl.BlockSpec((1, Wp), lambda b, t: (0, 0)),          # cb
            ],
            out_specs=pl.BlockSpec((bt, Wp), lambda b, t: (b, 0)),
            scratch_shapes=[
                pltpu.VMEM((bt, Hp), jnp.float32),        # h
                pltpu.VMEM((bt, Hp), jnp.float32),        # c
                pltpu.VMEM((Tc, bt, G), jnp.float32),     # chunk input gates
                pltpu.VMEM((Tc, bt, Hp), jnp.float32),    # chunk h history
                pltpu.VMEM((bt, Wp), jnp.float32),        # running max
                pltpu.VMEM((bt, Wp), jnp.float32),        # running denom
                pltpu.VMEM((bt, Wp), jnp.float32),        # running numer
            ],
        ),
        compiler_params=pltpu.CompilerParams(
            dimension_semantics=("parallel", "arbitrary"),
            vmem_limit_bytes=vmem_limit),
    )(x_tm, wih, bias, whh, hwcw, cb)


# -----------------------------------------------------------------------------
# Parameter preparation (padding H -> Hp, n_wiki -> Wp; weight concat/transpose)
# -----------------------------------------------------------------------------
def _round_up(x, m):
    return (x + m - 1) // m * m


def _pad_axis(a, axis, new):
    pad = [(0, 0)] * a.ndim
    pad[axis] = (0, new - a.shape[axis])
    return jnp.pad(a, pad)


def _prepare_weights(params, Hp, Wp, compute_dtype):
    H = params["w_hh"].shape[1]
    E = params["w_ih"].shape[1]
    # W_ih (4H, E) -> (E, 4Hp) with per-gate zero padding of the hidden dim.
    wih = _pad_axis(params["w_ih"].reshape(4, H, E), 1, Hp)
    wih = wih.reshape(4 * Hp, E).T
    # W_hh (4H, H) -> (Hp, 4Hp).
    whh = _pad_axis(_pad_axis(params["w_hh"].reshape(4, H, H), 1, Hp), 2, Hp)
    whh = whh.reshape(4 * Hp, Hp).T
    # Combined bias (4H,) -> (1, 4Hp); zero pads keep padded hidden units at 0.
    bias = _pad_axis((params["b_ih"] + params["b_hh"]).reshape(4, H), 1, Hp)
    bias = bias.reshape(1, 4 * Hp)
    # Attention / head weights (W, H) -> (Hp, Wp); concatenated -> (Hp, 2Wp).
    hw = _pad_axis(_pad_axis(params["Hw"], 0, Wp), 1, Hp).T
    cw = _pad_axis(_pad_axis(params["cw"], 0, Wp), 1, Hp).T
    hwcw = jnp.concatenate([hw, cw], axis=1)
    cb = _pad_axis(params["cb"], 0, Wp).reshape(1, Wp)
    return (wih.astype(compute_dtype), bias.astype(jnp.float32),
            whh.astype(compute_dtype), hwcw.astype(compute_dtype),
            cb.astype(jnp.float32))


def _pick_batch_tile(Bp):
    # Prefer >= 2 batch tiles (shards the "parallel" axis over v7x's two TCs)
    # while keeping tiles a multiple of 8 (layout constraint).
    cands = [d for d in range(8, Bp // 2 + 1, 8) if Bp % d == 0]
    return max(cands) if cands else Bp


def _pick_time_chunk(S, cap=16):
    for c in range(min(S, cap), 0, -1):
        if S % c == 0:
            return c
    return S


# -----------------------------------------------------------------------------
# Full forward: embedding gather in XLA glue, everything else fused in Pallas.
# -----------------------------------------------------------------------------
@partial(jax.jit, static_argnames=("batch_tile", "time_chunk", "compute_dtype"))
def lstmattn_forward(note, params, *, batch_tile=None, time_chunk=None,
                     compute_dtype=jnp.float32):
    B, S = note.shape
    H = params["w_hh"].shape[1]
    W = params["Hw"].shape[0]
    Hp = _round_up(H, 128)        # lane-aligned gate slices
    Wp = _round_up(W, 128)        # lane-dense output / softmax intermediates

    # Pad batch to a multiple of 8 so batch tiles satisfy the (8,128) rule.
    Bp = _round_up(B, 8)
    note_p = note if Bp == B else jnp.pad(note, ((0, Bp - B), (0, 0)))

    bt = _pick_batch_tile(Bp) if batch_tile is None else batch_tile
    Tc = _pick_time_chunk(S) if time_chunk is None else time_chunk
    assert Bp % bt == 0 and bt % 8 == 0, f"bad batch_tile {bt} for batch {Bp}"
    assert S % Tc == 0, f"time_chunk {Tc} must divide sequence length {S}"

    # Embedding gather directly in time-major order (no activation transpose).
    # Dropout(p=0.2) is an eval-mode identity -> omitted.
    x_tm = jnp.take(params["emb"], note_p.T, axis=0)          # (S, Bp, E) f32

    wih, bias, whh, hwcw, cb = _prepare_weights(params, Hp, Wp, compute_dtype)

    out_p = _lstmattn_pallas(x_tm, wih, bias, whh, hwcw, cb,
                             batch_tile=bt, time_chunk=Tc)     # (Bp, Wp)
    return out_p[:B, :W]
    # TODO(synk): self.ksi (forward_ksi) is None in this configuration and the
    # stateful self.hidden carry-over is a fresh zero init per forward here.


# -----------------------------------------------------------------------------
# Pure-JAX reference for correctness checking.
# -----------------------------------------------------------------------------
def reference_forward(note, params):
    emb = jnp.take(params["emb"], note, axis=0)
    x = jnp.transpose(emb, (1, 0, 2))                # (S, B, E)
    B = note.shape[0]
    H = params["w_hh"].shape[1]

    def step(carry, x_t):
        h, c = carry
        gates = (x_t @ params["w_ih"].T + params["b_ih"]
                 + h @ params["w_hh"].T + params["b_hh"])
        i, f, g, o = jnp.split(gates, 4, axis=1)
        i, f, o = jax.nn.sigmoid(i), jax.nn.sigmoid(f), jax.nn.sigmoid(o)
        g = jnp.tanh(g)
        c = f * c + i * g
        h = o * jnp.tanh(c)
        return (h, c), h

    h0 = jnp.zeros((B, H), jnp.float32)
    c0 = jnp.zeros((B, H), jnp.float32)
    _, lstm_out = jax.lax.scan(step, (h0, c0), x)     # (S, B, H)
    lo = jnp.transpose(lstm_out, (1, 0, 2))           # (B, S, H)

    alpha = jnp.einsum("wh,bsh->bws", params["Hw"], lo)
    alpha = jax.nn.softmax(alpha, axis=2)
    m = jnp.einsum("bws,bsh->bwh", alpha, lo)
    out = jnp.sum(params["cw"][None] * m, axis=2) + params["cb"][None]
    return jax.nn.sigmoid(out)


if __name__ == "__main__":
    # Small, shape-consistent configuration (batch chosen so the 2x2 grid —
    # 2 batch tiles x 2 time chunks — is actually exercised).
    n_words, n_wiki = 50, 64
    n_embedding, n_hidden = 16, 32
    batch, seq = 16, 8

    key = jax.random.PRNGKey(0)
    ks = jax.random.split(key, 9)

    params = {
        "emb":  0.1 * jax.random.normal(ks[0], (n_words + 1, n_embedding), jnp.float32),
        "w_ih": 0.1 * jax.random.normal(ks[1], (4 * n_hidden, n_embedding), jnp.float32),
        "w_hh": 0.1 * jax.random.normal(ks[2], (4 * n_hidden, n_hidden), jnp.float32),
        "b_ih": 0.1 * jax.random.normal(ks[3], (4 * n_hidden,), jnp.float32),
        "b_hh": 0.1 * jax.random.normal(ks[4], (4 * n_hidden,), jnp.float32),
        "Hw":   0.1 * jax.random.normal(ks[5], (n_wiki, n_hidden), jnp.float32),
        "cw":   0.1 * jax.random.normal(ks[6], (n_wiki, n_hidden), jnp.float32),
        "cb":   0.1 * jax.random.normal(ks[7], (n_wiki,), jnp.float32),
    }
    note = jax.random.randint(ks[8], (batch, seq), 0, n_words + 1, dtype=jnp.int32)

    ref = jax.block_until_ready(reference_forward(note, params))

    # f32 matmul operands: strict check (2 batch tiles x 2 time chunks).
    out_f32 = jax.block_until_ready(
        lstmattn_forward(note, params, batch_tile=8, time_chunk=4))
    assert out_f32.shape == (batch, n_wiki)
    assert jnp.allclose(out_f32, ref, atol=1e-4, rtol=1e-4), (
        f"f32 max abs diff {float(jnp.max(jnp.abs(out_f32 - ref)))}")

    # bf16 matmul operands (v6e/v7x recommendation), f32 accumulation: loose check.
    out_bf16 = jax.block_until_ready(
        lstmattn_forward(note, params, batch_tile=8, time_chunk=4,
                         compute_dtype=jnp.bfloat16))
    assert jnp.allclose(out_bf16, ref, atol=2.5e-2, rtol=0.0), (
        f"bf16 max abs diff {float(jnp.max(jnp.abs(out_bf16 - ref)))}")

    print("KERNEL_OK")
</pallas_src>

<mosaic_0001>
module attributes {stable_mosaic.version = 11 : i64} {
  func.func @fused_kernel(%arg0: i32, %arg1: i32, %arg2: memref<4x8x16xf32, #tpu.memory_space<vmem>>, %arg3: memref<16x512xf32, #tpu.memory_space<vmem>>, %arg4: memref<1x512xf32, #tpu.memory_space<vmem>>, %arg5: memref<128x512xf32, #tpu.memory_space<vmem>>, %arg6: memref<128x256xf32, #tpu.memory_space<vmem>>, %arg7: memref<1x128xf32, #tpu.memory_space<vmem>>, %arg8: memref<8x128xf32, #tpu.memory_space<vmem>>, %arg9: memref<8x128xf32, #tpu.memory_space<vmem>>, %arg10: memref<8x128xf32, #tpu.memory_space<vmem>>, %arg11: memref<4x8x512xf32, #tpu.memory_space<vmem>>, %arg12: memref<4x8x128xf32, #tpu.memory_space<vmem>>, %arg13: memref<8x128xf32, #tpu.memory_space<vmem>>, %arg14: memref<8x128xf32, #tpu.memory_space<vmem>>, %arg15: memref<8x128xf32, #tpu.memory_space<vmem>>) attributes {dimension_semantics = [#tpu.dimension_semantics<parallel>, #tpu.dimension_semantics<arbitrary>], iteration_bounds = array<i64: 2, 2>, scalar_prefetch = 0 : i64, scratch_operands = 7 : i64, tpu.core_type = #tpu.core_type<tc>, window_params = [{transform_indices = @transform_0, window_bounds = array<i64: 4, 8, 16>}, {pipeline_mode = #tpu.pipeline_mode<synchronous>, transform_indices = @transform_1, window_bounds = array<i64: 16, 512>}, {pipeline_mode = #tpu.pipeline_mode<synchronous>, transform_indices = @transform_2, window_bounds = array<i64: 1, 512>}, {pipeline_mode = #tpu.pipeline_mode<synchronous>, transform_indices = @transform_3, window_bounds = array<i64: 128, 512>}, {pipeline_mode = #tpu.pipeline_mode<synchronous>, transform_indices = @transform_4, window_bounds = array<i64: 128, 256>}, {pipeline_mode = #tpu.pipeline_mode<synchronous>, transform_indices = @transform_5, window_bounds = array<i64: 1, 128>}, {transform_indices = @transform_6, window_bounds = array<i64: 8, 128>}]} {
    %c0_i32 = arith.constant 0 : i32
    %0 = arith.cmpi eq, %arg1, %c0_i32 : i32
    %1 = arith.extui %0 : i1 to i32
    %c0_i32_0 = arith.constant 0 : i32
    %2 = arith.cmpi ne, %1, %c0_i32_0 : i32
    scf.if %2 {
      %cst_100 = arith.constant 0.000000e+00 : f32
      %208 = vector.broadcast %cst_100 : f32 to vector<8x128xf32>
      %c0_101 = arith.constant 0 : index
      %c0_102 = arith.constant 0 : index
      %209 = vector.load %arg9[%c0_101, %c0_102] : memref<8x128xf32, #tpu.memory_space<vmem>>, vector<8x128xf32>
      tpu.vector_store %arg9[%c0_101, %c0_102], %208 {strides = array<i32>} : memref<8x128xf32, #tpu.memory_space<vmem>>, vector<8x128xf32>,
      %cst_103 = arith.constant 0.000000e+00 : f32
      %210 = vector.broadcast %cst_103 : f32 to vector<8x128xf32>
      %c0_104 = arith.constant 0 : index
      %c0_105 = arith.constant 0 : index
      %211 = vector.load %arg10[%c0_104, %c0_105] : memref<8x128xf32, #tpu.memory_space<vmem>>, vector<8x128xf32>
      tpu.vector_store %arg10[%c0_104, %c0_105], %210 {strides = array<i32>} : memref<8x128xf32, #tpu.memory_space<vmem>>, vector<8x128xf32>,
      %cst_106 = arith.constant -1.000000e+30 : f32
      %212 = vector.broadcast %cst_106 : f32 to vector<8x128xf32>
      %c0_107 = arith.constant 0 : index
      %c0_108 = arith.constant 0 : index
      %213 = vector.load %arg13[%c0_107, %c0_108] : memref<8x128xf32, #tpu.memory_space<vmem>>, vector<8x128xf32>
      tpu.vector_store %arg13[%c0_107, %c0_108], %212 {strides = array<i32>} : memref<8x128xf32, #tpu.memory_space<vmem>>, vector<8x128xf32>,
      %cst_109 = arith.constant 0.000000e+00 : f32
      %214 = vector.broadcast %cst_109 : f32 to vector<8x128xf32>
      %c0_110 = arith.constant 0 : index
      %c0_111 = arith.constant 0 : index
      %215 = vector.load %arg14[%c0_110, %c0_111] : memref<8x128xf32, #tpu.memory_space<vmem>>, vector<8x128xf32>
      tpu.vector_store %arg14[%c0_110, %c0_111], %214 {strides = array<i32>} : memref<8x128xf32, #tpu.memory_space<vmem>>, vector<8x128xf32>,
      %cst_112 = arith.constant 0.000000e+00 : f32
      %216 = vector.broadcast %cst_112 : f32 to vector<8x128xf32>
      %c0_113 = arith.constant 0 : index
      %c0_114 = arith.constant 0 : index
      %217 = vector.load %arg15[%c0_113, %c0_114] : memref<8x128xf32, #tpu.memory_space<vmem>>, vector<8x128xf32>
      tpu.vector_store %arg15[%c0_113, %c0_114], %216 {strides = array<i32>} : memref<8x128xf32, #tpu.memory_space<vmem>>, vector<8x128xf32>,
    } else {
    }
    %c0 = arith.constant 0 : index
    %c0_1 = arith.constant 0 : index
    %c0_2 = arith.constant 0 : index
    %3 = vector.load %arg2[%c0, %c0_1, %c0_2] : memref<4x8x16xf32, #tpu.memory_space<vmem>>, vector<4x8x16xf32>
    %4 = vector.shape_cast %3 : vector<4x8x16xf32> to vector<32x16xf32>
    %c0_3 = arith.constant 0 : index
    %c0_4 = arith.constant 0 : index
    %5 = vector.load %arg3[%c0_3, %c0_4] : memref<16x512xf32, #tpu.memory_space<vmem>>, vector<16x512xf32>
    %cst = arith.constant dense<0.000000e+00> : vector<32x512xf32>
    %6 = tpu.matmul %4, %5, %cst {dimension_numbers = #tpu.dot_dimension_numbers<[1], [0], [0], [1], [0, 0, 1, 1], [], []>} : vector<32x16xf32>, vector<16x512xf32>, vector<32x512xf32> -> vector<32x512xf32>
    %c0_5 = arith.constant 0 : index
    %c0_6 = arith.constant 0 : index
    %7 = vector.load %arg4[%c0_5, %c0_6] : memref<1x512xf32, #tpu.memory_space<vmem>>, vector<1x512xf32>
    %8 = vector.broadcast %7 : vector<1x512xf32> to vector<32x512xf32>
    %9 = arith.addf %6, %8 : vector<32x512xf32>
    %10 = vector.shape_cast %9 : vector<32x512xf32> to vector<4x8x512xf32>
    %c0_7 = arith.constant 0 : index
    %c0_8 = arith.constant 0 : index
    %c0_9 = arith.constant 0 : index
    %11 = vector.load %arg11[%c0_7, %c0_8, %c0_9] : memref<4x8x512xf32, #tpu.memory_space<vmem>>, vector<4x8x512xf32>
    tpu.vector_store %arg11[%c0_7, %c0_8, %c0_9], %10 {strides = array<i32>} : memref<4x8x512xf32, #tpu.memory_space<vmem>>, vector<4x8x512xf32>,
    %c0_10 = arith.constant 0 : index
    %c0_11 = arith.constant 0 : index
    %12 = vector.load %arg5[%c0_10, %c0_11] : memref<128x512xf32, #tpu.memory_space<vmem>>, vector<128x512xf32>
    %c0_12 = arith.constant 0 : index
    %c0_13 = arith.constant 0 : index
    %13 = vector.load %arg9[%c0_12, %c0_13] : memref<8x128xf32, #tpu.memory_space<vmem>>, vector<8x128xf32>
    %c0_14 = arith.constant 0 : index
    %c0_15 = arith.constant 0 : index
    %14 = vector.load %arg10[%c0_14, %c0_15] : memref<8x128xf32, #tpu.memory_space<vmem>>, vector<8x128xf32>
    %c0_i32_16 = arith.constant 0 : i32
    %15 = arith.index_cast %c0_i32_16 : i32 to index
    %c0_17 = arith.constant 0 : index
    %c0_18 = arith.constant 0 : index
    %16 = vector.load %arg11[%15, %c0_17, %c0_18] : memref<4x8x512xf32, #tpu.memory_space<vmem>>, vector<1x8x512xf32>
    %17 = vector.shape_cast %16 : vector<1x8x512xf32> to vector<8x512xf32>
    %cst_19 = arith.constant dense<0.000000e+00> : vector<8x512xf32>
    %18 = tpu.matmul %13, %12, %cst_19 {dimension_numbers = #tpu.dot_dimension_numbers<[1], [0], [0], [1], [0, 0, 1, 1], [], []>} : vector<8x128xf32>, vector<128x512xf32>, vector<8x512xf32> -> vector<8x512xf32>
    %19 = arith.addf %17, %18 : vector<8x512xf32>
    %20 = vector.extract_strided_slice %19 {offsets = [0, 0], sizes = [8, 128], strides = [1, 1]} : vector<8x512xf32> to vector<8x128xf32>
    %cst_20 = arith.constant 5.000000e-01 : f32
    %21 = vector.broadcast %cst_20 : f32 to vector<8x128xf32>
    %22 = arith.mulf %21, %20 : vector<8x128xf32>
    %23 = math.tanh %22 : vector<8x128xf32>
    %cst_21 = arith.constant 5.000000e-01 : f32
    %24 = vector.broadcast %cst_21 : f32 to vector<8x128xf32>
    %25 = arith.mulf %24, %23 : vector<8x128xf32>
    %cst_22 = arith.constant 5.000000e-01 : f32
    %26 = vector.broadcast %cst_22 : f32 to vector<8x128xf32>
    %27 = arith.addf %25, %26 : vector<8x128xf32>
    %28 = vector.extract_strided_slice %19 {offsets = [0, 128], sizes = [8, 128], strides = [1, 1]} : vector<8x512xf32> to vector<8x128xf32>
    %cst_23 = arith.constant 5.000000e-01 : f32
    %29 = vector.broadcast %cst_23 : f32 to vector<8x128xf32>
    %30 = arith.mulf %29, %28 : vector<8x128xf32>
    %31 = math.tanh %30 : vector<8x128xf32>
    %cst_24 = arith.constant 5.000000e-01 : f32
    %32 = vector.broadcast %cst_24 : f32 to vector<8x128xf32>
    %33 = arith.mulf %32, %31 : vector<8x128xf32>
    %cst_25 = arith.constant 5.000000e-01 : f32
    %34 = vector.broadcast %cst_25 : f32 to vector<8x128xf32>
    %35 = arith.addf %33, %34 : vector<8x128xf32>
    %36 = vector.extract_strided_slice %19 {offsets = [0, 256], sizes = [8, 128], strides = [1, 1]} : vector<8x512xf32> to vector<8x128xf32>
    %37 = math.tanh %36 : vector<8x128xf32>
    %38 = vector.extract_strided_slice %19 {offsets = [0, 384], sizes = [8, 128], strides = [1, 1]} : vector<8x512xf32> to vector<8x128xf32>
    %cst_26 = arith.constant 5.000000e-01 : f32
    %39 = vector.broadcast %cst_26 : f32 to vector<8x128xf32>
    %40 = arith.mulf %39, %38 : vector<8x128xf32>
    %41 = math.tanh %40 : vector<8x128xf32>
    %cst_27 = arith.constant 5.000000e-01 : f32
    %42 = vector.broadcast %cst_27 : f32 to vector<8x128xf32>
    %43 = arith.mulf %42, %41 : vector<8x128xf32>
    %cst_28 = arith.constant 5.000000e-01 : f32
    %44 = vector.broadcast %cst_28 : f32 to vector<8x128xf32>
    %45 = arith.addf %43, %44 : vector<8x128xf32>
    %46 = arith.mulf %35, %14 : vector<8x128xf32>
    %47 = arith.mulf %27, %37 : vector<8x128xf32>
    %48 = arith.addf %46, %47 : vector<8x128xf32>
    %49 = math.tanh %48 : vector<8x128xf32>
    %50 = arith.mulf %45, %49 : vector<8x128xf32>
    %51 = arith.index_cast %c0_i32_16 : i32 to index
    %c0_29 = arith.constant 0 : index
    %c0_30 = arith.constant 0 : index
    %52 = vector.load %arg12[%51, %c0_29, %c0_30] : memref<4x8x128xf32, #tpu.memory_space<vmem>>, vector<1x8x128xf32>
    %53 = vector.shape_cast %52 : vector<1x8x128xf32> to vector<8x128xf32>
    %54 = vector.shape_cast %50 : vector<8x128xf32> to vector<1x8x128xf32>
    tpu.vector_store %arg12[%51, %c0_29, %c0_30], %54 {strides = array<i32>} : memref<4x8x128xf32, #tpu.memory_space<vmem>>, vector<1x8x128xf32>,
    %c1_i32 = arith.constant 1 : i32
    %55 = arith.index_cast %c1_i32 : i32 to index
    %c0_31 = arith.constant 0 : index
    %c0_32 = arith.constant 0 : index
    %56 = vector.load %arg11[%55, %c0_31, %c0_32] : memref<4x8x512xf32, #tpu.memory_space<vmem>>, vector<1x8x512xf32>
    %57 = vector.shape_cast %56 : vector<1x8x512xf32> to vector<8x512xf32>
    %cst_33 = arith.constant dense<0.000000e+00> : vector<8x512xf32>
    %58 = tpu.matmul %50, %12, %cst_33 {dimension_numbers = #tpu.dot_dimension_numbers<[1], [0], [0], [1], [0, 0, 1, 1], [], []>} : vector<8x128xf32>, vector<128x512xf32>, vector<8x512xf32> -> vector<8x512xf32>
    %59 = arith.addf %57, %58 : vector<8x512xf32>
    %60 = vector.extract_strided_slice %59 {offsets = [0, 0], sizes = [8, 128], strides = [1, 1]} : vector<8x512xf32> to vector<8x128xf32>
    %cst_34 = arith.constant 5.000000e-01 : f32
    %61 = vector.broadcast %cst_34 : f32 to vector<8x128xf32>
    %62 = arith.mulf %61, %60 : vector<8x128xf32>
    %63 = math.tanh %62 : vector<8x128xf32>
    %cst_35 = arith.constant 5.000000e-01 : f32
    %64 = vector.broadcast %cst_35 : f32 to vector<8x128xf32>
    %65 = arith.mulf %64, %63 : vector<8x128xf32>
    %cst_36 = arith.constant 5.000000e-01 : f32
    %66 = vector.broadcast %cst_36 : f32 to vector<8x128xf32>
    %67 = arith.addf %65, %66 : vector<8x128xf32>
    %68 = vector.extract_strided_slice %59 {offsets = [0, 128], sizes = [8, 128], strides = [1, 1]} : vector<8x512xf32> to vector<8x128xf32>
    %cst_37 = arith.constant 5.000000e-01 : f32
    %69 = vector.broadcast %cst_37 : f32 to vector<8x128xf32>
    %70 = arith.mulf %69, %68 : vector<8x128xf32>
    %71 = math.tanh %70 : vector<8x128xf32>
    %cst_38 = arith.constant 5.000000e-01 : f32
    %72 = vector.broadcast %cst_38 : f32 to vector<8x128xf32>
    %73 = arith.mulf %72, %71 : vector<8x128xf32>
    %cst_39 = arith.constant 5.000000e-01 : f32
    %74 = vector.broadcast %cst_39 : f32 to vector<8x128xf32>
    %75 = arith.addf %73, %74 : vector<8x128xf32>
    %76 = vector.extract_strided_slice %59 {offsets = [0, 256], sizes = [8, 128], strides = [1, 1]} : vector<8x512xf32> to vector<8x128xf32>
    %77 = math.tanh %76 : vector<8x128xf32>
    %78 = vector.extract_strided_slice %59 {offsets = [0, 384], sizes = [8, 128], strides = [1, 1]} : vector<8x512xf32> to vector<8x128xf32>
    %cst_40 = arith.constant 5.000000e-01 : f32
    %79 = vector.broadcast %cst_40 : f32 to vector<8x128xf32>
    %80 = arith.mulf %79, %78 : vector<8x128xf32>
    %81 = math.tanh %80 : vector<8x128xf32>
    %cst_41 = arith.constant 5.000000e-01 : f32
    %82 = vector.broadcast %cst_41 : f32 to vector<8x128xf32>
    %83 = arith.mulf %82, %81 : vector<8x128xf32>
    %cst_42 = arith.constant 5.000000e-01 : f32
    %84 = vector.broadcast %cst_42 : f32 to vector<8x128xf32>
    %85 = arith.addf %83, %84 : vector<8x128xf32>
    %86 = arith.mulf %75, %48 : vector<8x128xf32>
    %87 = arith.mulf %67, %77 : vector<8x128xf32>
    %88 = arith.addf %86, %87 : vector<8x128xf32>
    %89 = math.tanh %88 : vector<8x128xf32>
    %90 = arith.mulf %85, %89 : vector<8x128xf32>
    %91 = arith.index_cast %c1_i32 : i32 to index
    %c0_43 = arith.constant 0 : index
    %c0_44 = arith.constant 0 : index
    %92 = vector.load %arg12[%91, %c0_43, %c0_44] : memref<4x8x128xf32, #tpu.memory_space<vmem>>, vector<1x8x128xf32>
    %93 = vector.shape_cast %92 : vector<1x8x128xf32> to vector<8x128xf32>
    %94 = vector.shape_cast %90 : vector<8x128xf32> to vector<1x8x128xf32>
    tpu.vector_store %arg12[%91, %c0_43, %c0_44], %94 {strides = array<i32>} : memref<4x8x128xf32, #tpu.memory_space<vmem>>, vector<1x8x128xf32>,
    %c2_i32 = arith.constant 2 : i32
    %95 = arith.index_cast %c2_i32 : i32 to index
    %c0_45 = arith.constant 0 : index
    %c0_46 = arith.constant 0 : index
    %96 = vector.load %arg11[%95, %c0_45, %c0_46] : memref<4x8x512xf32, #tpu.memory_space<vmem>>, vector<1x8x512xf32>
    %97 = vector.shape_cast %96 : vector<1x8x512xf32> to vector<8x512xf32>
    %cst_47 = arith.constant dense<0.000000e+00> : vector<8x512xf32>
    %98 = tpu.matmul %90, %12, %cst_47 {dimension_numbers = #tpu.dot_dimension_numbers<[1], [0], [0], [1], [0, 0, 1, 1], [], []>} : vector<8x128xf32>, vector<128x512xf32>, vector<8x512xf32> -> vector<8x512xf32>
    %99 = arith.addf %97, %98 : vector<8x512xf32>
    %100 = vector.extract_strided_slice %99 {offsets = [0, 0], sizes = [8, 128], strides = [1, 1]} : vector<8x512xf32> to vector<8x128xf32>
    %cst_48 = arith.constant 5.000000e-01 : f32
    %101 = vector.broadcast %cst_48 : f32 to vector<8x128xf32>
    %102 = arith.mulf %101, %100 : vector<8x128xf32>
    %103 = math.tanh %102 : vector<8x128xf32>
    %cst_49 = arith.constant 5.000000e-01 : f32
    %104 = vector.broadcast %cst_49 : f32 to vector<8x128xf32>
    %105 = arith.mulf %104, %103 : vector<8x128xf32>
    %cst_50 = arith.constant 5.000000e-01 : f32
    %106 = vector.broadcast %cst_50 : f32 to vector<8x128xf32>
    %107 = arith.addf %105, %106 : vector<8x128xf32>
    %108 = vector.extract_strided_slice %99 {offsets = [0, 128], sizes = [8, 128], strides = [1, 1]} : vector<8x512xf32> to vector<8x128xf32>
    %cst_51 = arith.constant 5.000000e-01 : f32
    %109 = vector.broadcast %cst_51 : f32 to vector<8x128xf32>
    %110 = arith.mulf %109, %108 : vector<8x128xf32>
    %111 = math.tanh %110 : vector<8x128xf32>
    %cst_52 = arith.constant 5.000000e-01 : f32
    %112 = vector.broadcast %cst_52 : f32 to vector<8x128xf32>
    %113 = arith.mulf %112, %111 : vector<8x128xf32>
    %cst_53 = arith.constant 5.000000e-01 : f32
    %114 = vector.broadcast %cst_53 : f32 to vector<8x128xf32>
    %115 = arith.addf %113, %114 : vector<8x128xf32>
    %116 = vector.extract_strided_slice %99 {offsets = [0, 256], sizes = [8, 128], strides = [1, 1]} : vector<8x512xf32> to vector<8x128xf32>
    %117 = math.tanh %116 : vector<8x128xf32>
    %118 = vector.extract_strided_slice %99 {offsets = [0, 384], sizes = [8, 128], strides = [1, 1]} : vector<8x512xf32> to vector<8x128xf32>
    %cst_54 = arith.constant 5.000000e-01 : f32
    %119 = vector.broadcast %cst_54 : f32 to vector<8x128xf32>
    %120 = arith.mulf %119, %118 : vector<8x128xf32>
    %121 = math.tanh %120 : vector<8x128xf32>
    %cst_55 = arith.constant 5.000000e-01 : f32
    %122 = vector.broadcast %cst_55 : f32 to vector<8x128xf32>
    %123 = arith.mulf %122, %121 : vector<8x128xf32>
    %cst_56 = arith.constant 5.000000e-01 : f32
    %124 = vector.broadcast %cst_56 : f32 to vector<8x128xf32>
    %125 = arith.addf %123, %124 : vector<8x128xf32>
    %126 = arith.mulf %115, %88 : vector<8x128xf32>
    %127 = arith.mulf %107, %117 : vector<8x128xf32>
    %128 = arith.addf %126, %127 : vector<8x128xf32>
    %129 = math.tanh %128 : vector<8x128xf32>
    %130 = arith.mulf %125, %129 : vector<8x128xf32>
    %131 = arith.index_cast %c2_i32 : i32 to index
    %c0_57 = arith.constant 0 : index
    %c0_58 = arith.constant 0 : index
    %132 = vector.load %arg12[%131, %c0_57, %c0_58] : memref<4x8x128xf32, #tpu.memory_space<vmem>>, vector<1x8x128xf32>
    %133 = vector.shape_cast %132 : vector<1x8x128xf32> to vector<8x128xf32>
    %134 = vector.shape_cast %130 : vector<8x128xf32> to vector<1x8x128xf32>
    tpu.vector_store %arg12[%131, %c0_57, %c0_58], %134 {strides = array<i32>} : memref<4x8x128xf32, #tpu.memory_space<vmem>>, vector<1x8x128xf32>,
    %c3_i32 = arith.constant 3 : i32
    %135 = arith.index_cast %c3_i32 : i32 to index
    %c0_59 = arith.constant 0 : index
    %c0_60 = arith.constant 0 : index
    %136 = vector.load %arg11[%135, %c0_59, %c0_60] : memref<4x8x512xf32, #tpu.memory_space<vmem>>, vector<1x8x512xf32>
    %137 = vector.shape_cast %136 : vector<1x8x512xf32> to vector<8x512xf32>
    %cst_61 = arith.constant dense<0.000000e+00> : vector<8x512xf32>
    %138 = tpu.matmul %130, %12, %cst_61 {dimension_numbers = #tpu.dot_dimension_numbers<[1], [0], [0], [1], [0, 0, 1, 1], [], []>} : vector<8x128xf32>, vector<128x512xf32>, vector<8x512xf32> -> vector<8x512xf32>
    %139 = arith.addf %137, %138 : vector<8x512xf32>
    %140 = vector.extract_strided_slice %139 {offsets = [0, 0], sizes = [8, 128], strides = [1, 1]} : vector<8x512xf32> to vector<8x128xf32>
    %cst_62 = arith.constant 5.000000e-01 : f32
    %141 = vector.broadcast %cst_62 : f32 to vector<8x128xf32>
    %142 = arith.mulf %141, %140 : vector<8x128xf32>
    %143 = math.tanh %142 : vector<8x128xf32>
    %cst_63 = arith.constant 5.000000e-01 : f32
    %144 = vector.broadcast %cst_63 : f32 to vector<8x128xf32>
    %145 = arith.mulf %144, %143 : vector<8x128xf32>
    %cst_64 = arith.constant 5.000000e-01 : f32
    %146 = vector.broadcast %cst_64 : f32 to vector<8x128xf32>
    %147 = arith.addf %145, %146 : vector<8x128xf32>
    %148 = vector.extract_strided_slice %139 {offsets = [0, 128], sizes = [8, 128], strides = [1, 1]} : vector<8x512xf32> to vector<8x128xf32>
    %cst_65 = arith.constant 5.000000e-01 : f32
    %149 = vector.broadcast %cst_65 : f32 to vector<8x128xf32>
    %150 = arith.mulf %149, %148 : vector<8x128xf32>
    %151 = math.tanh %150 : vector<8x128xf32>
    %cst_66 = arith.constant 5.000000e-01 : f32
    %152 = vector.broadcast %cst_66 : f32 to vector<8x128xf32>
    %153 = arith.mulf %152, %151 : vector<8x128xf32>
    %cst_67 = arith.constant 5.000000e-01 : f32
    %154 = vector.broadcast %cst_67 : f32 to vector<8x128xf32>
    %155 = arith.addf %153, %154 : vector<8x128xf32>
    %156 = vector.extract_strided_slice %139 {offsets = [0, 256], sizes = [8, 128], strides = [1, 1]} : vector<8x512xf32> to vector<8x128xf32>
    %157 = math.tanh %156 : vector<8x128xf32>
    %158 = vector.extract_strided_slice %139 {offsets = [0, 384], sizes = [8, 128], strides = [1, 1]} : vector<8x512xf32> to vector<8x128xf32>
    %cst_68 = arith.constant 5.000000e-01 : f32
    %159 = vector.broadcast %cst_68 : f32 to vector<8x128xf32>
    %160 = arith.mulf %159, %158 : vector<8x128xf32>
    %161 = math.tanh %160 : vector<8x128xf32>
    %cst_69 = arith.constant 5.000000e-01 : f32
    %162 = vector.broadcast %cst_69 : f32 to vector<8x128xf32>
    %163 = arith.mulf %162, %161 : vector<8x128xf32>
    %cst_70 = arith.constant 5.000000e-01 : f32
    %164 = vector.broadcast %cst_70 : f32 to vector<8x128xf32>
    %165 = arith.addf %163, %164 : vector<8x128xf32>
    %166 = arith.mulf %155, %128 : vector<8x128xf32>
    %167 = arith.mulf %147, %157 : vector<8x128xf32>
    %168 = arith.addf %166, %167 : vector<8x128xf32>
    %169 = math.tanh %168 : vector<8x128xf32>
    %170 = arith.mulf %165, %169 : vector<8x128xf32>
    %171 = arith.index_cast %c3_i32 : i32 to index
    %c0_71 = arith.constant 0 : index
    %c0_72 = arith.constant 0 : index
    %172 = vector.load %arg12[%171, %c0_71, %c0_72] : memref<4x8x128xf32, #tpu.memory_space<vmem>>, vector<1x8x128xf32>
    %173 = vector.shape_cast %172 : vector<1x8x128xf32> to vector<8x128xf32>
    %174 = vector.shape_cast %170 : vector<8x128xf32> to vector<1x8x128xf32>
    tpu.vector_store %arg12[%171, %c0_71, %c0_72], %174 {strides = array<i32>} : memref<4x8x128xf32, #tpu.memory_space<vmem>>, vector<1x8x128xf32>,
    %c4_i32 = arith.constant 4 : i32
    %c0_73 = arith.constant 0 : index
    %c0_74 = arith.constant 0 : index
    %175 = vector.load %arg9[%c0_73, %c0_74] : memref<8x128xf32, #tpu.memory_space<vmem>>, vector<8x128xf32>
    tpu.vector_store %arg9[%c0_73, %c0_74], %170 {strides = array<i32>} : memref<8x128xf32, #tpu.memory_space<vmem>>, vector<8x128xf32>,
    %c0_75 = arith.constant 0 : index
    %c0_76 = arith.constant 0 : index
    %176 = vector.load %arg10[%c0_75, %c0_76] : memref<8x128xf32, #tpu.memory_space<vmem>>, vector<8x128xf32>
    tpu.vector_store %arg10[%c0_75, %c0_76], %168 {strides = array<i32>} : memref<8x128xf32, #tpu.memory_space<vmem>>, vector<8x128xf32>,
    %c0_77 = arith.constant 0 : index
    %c0_78 = arith.constant 0 : index
    %c0_79 = arith.constant 0 : index
    %177 = vector.load %arg12[%c0_77, %c0_78, %c0_79] : memref<4x8x128xf32, #tpu.memory_space<vmem>>, vector<4x8x128xf32>
    %178 = vector.shape_cast %177 : vector<4x8x128xf32> to vector<32x128xf32>
    %c0_80 = arith.constant 0 : index
    %c0_81 = arith.constant 0 : index
    %179 = vector.load %arg6[%c0_80, %c0_81] : memref<128x256xf32, #tpu.memory_space<vmem>>, vector<128x256xf32>
    %cst_82 = arith.constant dense<0.000000e+00> : vector<32x256xf32>
    %180 = tpu.matmul %178, %179, %cst_82 {dimension_numbers = #tpu.dot_dimension_numbers<[1], [0], [0], [1], [0, 0, 1, 1], [], []>} : vector<32x128xf32>, vector<128x256xf32>, vector<32x256xf32> -> vector<32x256xf32>
    %181 = vector.shape_cast %180 : vector<32x256xf32> to vector<4x8x256xf32>
    %182 = vector.extract_strided_slice %181 {offsets = [0, 0, 0], sizes = [4, 8, 128], strides = [1, 1, 1]} : vector<4x8x256xf32> to vector<4x8x128xf32>
    %183 = vector.extract_strided_slice %181 {offsets = [0, 0, 128], sizes = [4, 8, 128], strides = [1, 1, 1]} : vector<4x8x256xf32> to vector<4x8x128xf32>
    %c0_83 = arith.constant 0 : index
    %c0_84 = arith.constant 0 : index
    %184 = vector.load %arg13[%c0_83, %c0_84] : memref<8x128xf32, #tpu.memory_space<vmem>>, vector<8x128xf32>
    %cst_85 = arith.constant dense<0xFF800000> : vector<8x128xf32>
    %185 = vector.multi_reduction <maximumf>, %182, %cst_85 [0] : vector<4x8x128xf32> to vector<8x128xf32>
    %186 = arith.maximumf %184, %185 : vector<8x128xf32>
    %187 = arith.subf %184, %186 : vector<8x128xf32>
    %188 = math.exp %187 : vector<8x128xf32>
    %189 = vector.shape_cast %186 : vector<8x128xf32> to vector<1x8x128xf32>
    %190 = vector.broadcast %189 : vector<1x8x128xf32> to vector<4x8x128xf32>
    %191 = arith.subf %182, %190 : vector<4x8x128xf32>
    %192 = math.exp %191 : vector<4x8x128xf32>
    %c0_86 = arith.constant 0 : index
    %c0_87 = arith.constant 0 : index
    %193 = vector.load %arg14[%c0_86, %c0_87] : memref<8x128xf32, #tpu.memory_space<vmem>>, vector<8x128xf32>
    %194 = arith.mulf %188, %193 : vector<8x128xf32>
    %cst_88 = arith.constant dense<0.000000e+00> : vector<8x128xf32>
    %195 = vector.multi_reduction <add>, %192, %cst_88 [0] : vector<4x8x128xf32> to vector<8x128xf32>
    %196 = arith.addf %194, %195 : vector<8x128xf32>
    %c0_89 = arith.constant 0 : index
    %c0_90 = arith.constant 0 : index
    %197 = vector.load %arg14[%c0_89, %c0_90] : memref<8x128xf32, #tpu.memory_space<vmem>>, vector<8x128xf32>
    tpu.vector_store %arg14[%c0_89, %c0_90], %196 {strides = array<i32>} : memref<8x128xf32, #tpu.memory_space<vmem>>, vector<8x128xf32>,
    %c0_91 = arith.constant 0 : index
    %c0_92 = arith.constant 0 : index
    %198 = vector.load %arg15[%c0_91, %c0_92] : memref<8x128xf32, #tpu.memory_space<vmem>>, vector<8x128xf32>
    %199 = arith.mulf %188, %198 : vector<8x128xf32>
    %200 = arith.mulf %192, %183 : vector<4x8x128xf32>
    %cst_93 = arith.constant dense<0.000000e+00> : vector<8x128xf32>
    %201 = vector.multi_reduction <add>, %200, %cst_93 [0] : vector<4x8x128xf32> to vector<8x128xf32>
    %202 = arith.addf %199, %201 : vector<8x128xf32>
    %c0_94 = arith.constant 0 : index
    %c0_95 = arith.constant 0 : index
    %203 = vector.load %arg15[%c0_94, %c0_95] : memref<8x128xf32, #tpu.memory_space<vmem>>, vector<8x128xf32>
    tpu.vector_store %arg15[%c0_94, %c0_95], %202 {strides = array<i32>} : memref<8x128xf32, #tpu.memory_space<vmem>>, vector<8x128xf32>,
    %c0_96 = arith.constant 0 : index
    %c0_97 = arith.constant 0 : index
    %204 = vector.load %arg13[%c0_96, %c0_97] : memref<8x128xf32, #tpu.memory_space<vmem>>, vector<8x128xf32>
    tpu.vector_store %arg13[%c0_96, %c0_97], %186 {strides = array<i32>} : memref<8x128xf32, #tpu.memory_space<vmem>>, vector<8x128xf32>,
    %c1_i32_98 = arith.constant 1 : i32
    %205 = arith.cmpi eq, %arg1, %c1_i32_98 : i32
    %206 = arith.extui %205 : i1 to i32
    %c0_i32_99 = arith.constant 0 : i32
    %207 = arith.cmpi ne, %206, %c0_i32_99 : i32
    scf.if %207 {
      %c0_100 = arith.constant 0 : index
      %c0_101 = arith.constant 0 : index
      %208 = vector.load %arg15[%c0_100, %c0_101] : memref<8x128xf32, #tpu.memory_space<vmem>>, vector<8x128xf32>
      %c0_102 = arith.constant 0 : index
      %c0_103 = arith.constant 0 : index
      %209 = vector.load %arg14[%c0_102, %c0_103] : memref<8x128xf32, #tpu.memory_space<vmem>>, vector<8x128xf32>
      %210 = arith.divf %208, %209 : vector<8x128xf32>
      %c0_104 = arith.constant 0 : index
      %c0_105 = arith.constant 0 : index
      %211 = vector.load %arg7[%c0_104, %c0_105] : memref<1x128xf32, #tpu.memory_space<vmem>>, vector<1x128xf32>
      %212 = vector.broadcast %211 : vector<1x128xf32> to vector<8x128xf32>
      %213 = arith.addf %210, %212 : vector<8x128xf32>
      %cst_106 = arith.constant 5.000000e-01 : f32
      %214 = vector.broadcast %cst_106 : f32 to vector<8x128xf32>
      %215 = arith.mulf %214, %213 : vector<8x128xf32>
      %216 = math.tanh %215 : vector<8x128xf32>
      %cst_107 = arith.constant 5.000000e-01 : f32
      %217 = vector.broadcast %cst_107 : f32 to vector<8x128xf32>
      %218 = arith.mulf %217, %216 : vector<8x128xf32>
      %cst_108 = arith.constant 5.000000e-01 : f32
      %219 = vector.broadcast %cst_108 : f32 to vector<8x128xf32>
      %220 = arith.addf %218, %219 : vector<8x128xf32>
      %c0_109 = arith.constant 0 : index
      %c0_110 = arith.constant 0 : index
      %221 = vector.load %arg8[%c0_109, %c0_110] : memref<8x128xf32, #tpu.memory_space<vmem>>, vector<8x128xf32>
      tpu.vector_store %arg8[%c0_109, %c0_110], %220 {strides = array<i32>} : memref<8x128xf32, #tpu.memory_space<vmem>>, vector<8x128xf32>,
    } else {
    }
    return
  }
  func.func @transform_0(%arg0: i32, %arg1: i32) -> (i32, i32, i32) {
    %c0_i32 = arith.constant 0 : i32
    %c0_i32_0 = arith.constant 0 : i32
    return %arg1, %arg0, %c0_i32 : i32, i32, i32
  }
  func.func @transform_1(%arg0: i32, %arg1: i32) -> (i32, i32) {
    %c0_i32 = arith.constant 0 : i32
    %c0_i32_0 = arith.constant 0 : i32
    %c0_i32_1 = arith.constant 0 : i32
    return %c0_i32, %c0_i32_0 : i32, i32
  }
  func.func @transform_2(%arg0: i32, %arg1: i32) -> (i32, i32) {
    %c0_i32 = arith.constant 0 : i32
    %c0_i32_0 = arith.constant 0 : i32
    %c0_i32_1 = arith.constant 0 : i32
    return %c0_i32, %c0_i32_0 : i32, i32
  }
  func.func @transform_3(%arg0: i32, %arg1: i32) -> (i32, i32) {
    %c0_i32 = arith.constant 0 : i32
    %c0_i32_0 = arith.constant 0 : i32
    %c0_i32_1 = arith.constant 0 : i32
    return %c0_i32, %c0_i32_0 : i32, i32
  }
  func.func @transform_4(%arg0: i32, %arg1: i32) -> (i32, i32) {
    %c0_i32 = arith.constant 0 : i32
    %c0_i32_0 = arith.constant 0 : i32
    %c0_i32_1 = arith.constant 0 : i32
    return %c0_i32, %c0_i32_0 : i32, i32
  }
  func.func @transform_5(%arg0: i32, %arg1: i32) -> (i32, i32) {
    %c0_i32 = arith.constant 0 : i32
    %c0_i32_0 = arith.constant 0 : i32
    %c0_i32_1 = arith.constant 0 : i32
    return %c0_i32, %c0_i32_0 : i32, i32
  }
  func.func @transform_6(%arg0: i32, %arg1: i32) -> (i32, i32) {
    %c0_i32 = arith.constant 0 : i32
    %c0_i32_0 = arith.constant 0 : i32
    return %arg0, %c0_i32 : i32, i32
  }
}

</mosaic_0001>

<bundles_post_ra>
// kernel: lstmattn_forward.1
= control target key start
LH: loop header
LB: loop body
LE: loop exit
PB: predicated region body
PF: predicated region fallthrough
CT: control target
= control target key end

     0   :  { %s2568_s0 = inlined_call_operand.vmem [shape: f32[8,16,16], index: 0, kind: input, shape index: {}]   ;;  %s2569_s1 = inlined_call_operand.vmem [shape: f32[16,512], index: 1, kind: input, shape index: {}]   ;;  %s2570_s2 = inlined_call_operand.vmem [shape: f32[1,512], index: 2, kind: input, shape index: {}]   ;;  %s2571_s3 = inlined_call_operand.vmem [shape: f32[128,512], index: 3, kind: input, shape index: {}]   ;;  %s2572_s4 = inlined_call_operand.vmem [shape: f32[128,256], index: 4, kind: input, shape index: {}]   ;;  %s2573_s5 = inlined_call_operand.vmem [shape: f32[1,128], index: 5, kind: input, shape index: {}]   ;;  %s2574_s6 = inlined_call_operand.hbm [shape: f32[16,128], index: 6, kind: output, shape index: {}]  }
   0x1   :  { %2607 = sst [smem:[#allocation46_spill]] %s2568_s0 }
   0x2   :  { %2608 = sst [smem:[#allocation47_spill]] %s2569_s1 }
   0x3   :  { %11 = vsyncpa [#allocation11], 0 }
   0x4   :  { %13 = vsyncpa [#allocation11 + $0x1], 0  ;;  %s1578_s21 = smov 0   ;;  %s1580_s22 = smov 0  }
   0x5   :  { %s1582_s23 = smov 0   ;;  %s1584_s24 = smov 0  }
   0x6   :  { %s1586_s25 = smov 0   ;;  %s1588_s26 = smov 0  }
   0x7   :  { %s1590_s27 = smov 0   ;;  %s1592_s28 = smov 0  }
   0x8   :  { %s1594_s29 = smov 0   ;;  %s1596_s30 = smov 0  }
   0x9 LB: > { %s1251_s7 = sadd.s32 4294967295, %s1539_s30   ;;  %s1252_s8 = sadd.s32 4294967294, %s1539_s30   ;;  %s1539_s30 = sphi %s1596_s30, %s19_s30   ;;  %s1535_s29 = sphi %s1594_s29, %s2695_s29   ;;  %s1531_s28 = sphi %s1592_s28, %s2694_s28   ;;  %s1527_s27 = sphi %s1590_s27, %s2693_s27   ;;  %s1523_s26 = sphi %s1588_s26, %s2692_s26   ;;  %s1519_s25 = sphi %s1586_s25, %s2691_s25   ;;  %s1515_s24 = sphi %s1584_s24, %s2690_s24   ;;  %s1511_s23 = sphi %s1582_s23, %s2689_s23   ;;  %s1507_s22 = sphi %s1580_s22, %s2688_s22   ;;  %s1503_s21 = sphi %s1578_s21, %s2687_s21  }
   0xa   : > { %s28_s9 = sadd.s32 1, %s1531_s28  ;;  %s31_s10 = sadd.s32 1, %s1535_s29 }
   0xb   : > { %p29_p0 = scmp.ge.s32.totalorder %s28_s9, 2  ;;  %s40_s11 = sadd.s32 1, %s1519_s25 }
   0xc   : > { %p47_p1 = scmp.ne.s32.totalorder %s1519_s25, %s1515_s24  ;;  %p48_p2 = scmp.eq.s32.totalorder %s1539_s30, 0 }
   0xd   : > { %s2697_s9 = smov (%p29_p0, %s28_s9), 0  ;;  %s2699_s10 = smov (!%p29_p0, %s31_s10), %s1535_s29 }
   0xe   : > { %2609 = sst [smem:[#allocation13_spill]] %s2697_s9  ;;  %s35_s12 = ssub.s32 %s1531_s28, %s2697_s9 }
   0xf   : > { %p1641_p3 = por %p48_p2, %p47_p1  ;;  %p33_p4 = scmp.ge.s32.totalorder %s2699_s10, 2 }
  0x10   : > { %s171_s14 = sadd.s32 1, %s1511_s23  ;;  %p181_p5 = scmp.ne.s32.totalorder %s1511_s23, %s1507_s22 }
  0x11   : > { %p182_p6 = scmp.eq.s32.totalorder %s1251_s7, 3  ;;  %s2701_s10 = smov (%p33_p4, %s2699_s10), 0 }
  0x12   : > { %2611 = sst [smem:[#allocation14_spill]] %s2701_s10  ;;  %p187_p8 = scmp.ne.s32.totalorder %s1507_s22, %s1503_s21 }
  0x13   : > { %p1650_p7 = por %p182_p6, %p181_p5  ;;  %s36_s16 = ssub.s32 %s1535_s29, %s2701_s10 }
  0x14   : > { %p188_p9 = scmp.eq.s32.totalorder %s1252_s8, 3  ;;  %s37_s17 = sor.u32 %s36_s16, %s35_s12 }
  0x15   : > { %p169_p10 = scmp.eq.s32.totalorder %s36_s16, 0  ;;  %p38_p11 = scmp.eq.s32.totalorder %s37_s17, 0 }
  0x16   : > { %p1658_p12 = por %p188_p9, %p187_p8  ;;  %p1254_p13 = scmp.ge.s32.totalorder %s1539_s30, 4 }
  0x17   : > { %s1663_s19 = scalar_select %p169_p10, %s1511_s23, %s171_s14  }
  0x18   : > { %s1666_s20 = scalar_select %p38_p11, %s1519_s25, %s40_s11  }
  0x19   : > { %219 = sbr.rel (%p1254_p13) target bundleno = 44 (0x2c), region = 36 }
  0x1e   : > { %222 = sbr.rel (!%p1641_p3) target bundleno = 44 (0x2c), region = 40  ;;  %s224_s7 = sand.u32 (%p1641_p3), 1, %s1519_s25  }
  0x1f   : > { %s1284_s8 = sshll.u32 (%p1641_p3), %s1531_s28, 3  ;;  %s1255_s12 = sshll.u32 (%p1641_p3), %s224_s7, 5 }
  0x20   : > { %s229_s16 = sadd.s32 (%p1641_p3), %s1535_s29, %s1284_s8  ;;  %s2614_s0 = sld [smem:[#allocation46_spill]] (%p1641_p3) }
  0x21   : > { %s1258_s17 = sshll.u32 (%p1641_p3), %s229_s16, 3  ;;  %s226_s11 = scalar_lea.vmem (%p1641_p3), [#allocation9], %s1255_s12 }
  0x26   : > { %s231_s14 = scalar_lea.vmem %s2614_s0, %s1258_s17 }
  0x27   : > { %v266_v0 = vld [vmem:[%s231_s14] sm:$0xff]  ;;  %v268_v1 = vld [vmem:[%s231_s14 + $0x10] sm:$0xff] }
  0x28   : > { %v270_v2 = vld [vmem:[%s231_s14 + $0x20] sm:$0xff]  ;;  %267 = vst [vmem:[%s226_s11] sm:$0xff] %v266_v0  ;;  %v272_v3 = vld [vmem:[%s231_s14 + $0x30] sm:$0xff] }
  0x29   : > { %269 = vst [vmem:[%s226_s11 + $0x8] sm:$0xff] %v268_v1 }
  0x2a   : > { %271 = vst [vmem:[%s226_s11 + $0x10] sm:$0xff] %v270_v2 }
  0x2b   : > { %273 = vst [vmem:[%s226_s11 + $0x18] sm:$0xff] %v272_v3 }
  0x2c PF: > { %p1259_p0 = scmp.ge.s32.totalorder %s1539_s30, 1  ;;  %p278_p1 = scmp.lt.s32.totalorder %s1539_s30, 5 }
  0x2e   : > { %p279_p2 = pnand %p1259_p0, %p278_p1 }
  0x30   : > { %282 = sbr.rel (%p279_p2) target bundleno = 972 (0x3cc), region = 78 }
  0x35   : > { %s285_s9 = sand.u32 1, %s1515_s24   ;;  %s2577_s10 = sand.u32 1, %s1507_s22  }
  0x36   : > { %s1260_s13 = sshll.u32 %s285_s9, 5  ;;  %s1683_s7 = sshll.u32 %s2577_s10, 3 }
  0x37   : > { %s1685_s8 = scalar_lea.vmem [#allocation9], %s1260_s13  ;;  %p1262_p3 = scmp.ne.s32.totalorder %s1523_s26, 0 }
  0x39   : > { %318 = sbr.rel (%p1262_p3) target bundleno = 68 (0x44), region = 86 }
  0x3e   : > { %v1541_v4 = vmov 0.0   ;;  %v1542_v5 = vmov -1e+30  }
  0x3f   : > { %319 = vst [vmem:[#allocation2] sm:$0xff] %v1541_v4 }
  0x40   : > { %320 = vst [vmem:[#allocation3] sm:$0xff] %v1541_v4 }
  0x41   : > { %322 = vst [vmem:[#allocation7] sm:$0xff] %v1541_v4 }
  0x42   : > { %323 = vst [vmem:[#allocation8] sm:$0xff] %v1541_v4 }
  0x43   : > { %321 = vst [vmem:[#allocation6] sm:$0xff] %v1542_v5 }
  0x44 PF: > { %s2615_s1 = sld [smem:[#allocation47_spill]]  ;;  %v1704_v10 = vld [vmem:[%s2571_s3 + $0x1e0] sm:$0xff]  ;;  %v1709_v11 = vld [vmem:[%s2571_s3 + $0x1e8] sm:$0xff]  ;;  %vm346_vm0 = vcmask 130048   ;;  %v1791_v25 = vld [vmem:[%s1685_s8 + $0x8] sm:$0xff]  ;;  %p1279_p4 = scmp.ne.s32.totalorder %s1523_s26, 1 }
  0x45   : > { %v1714_v12 = vld [vmem:[%s2571_s3 + $0x1c0] sm:$0xff]  ;;  %v1719_v13 = vld [vmem:[%s2571_s3 + $0x1c8] sm:$0xff]  ;;  %v1846_v34 = vld [vmem:[%s1685_s8 + $0x10] sm:$0xff]  ;;  %s2682_s13 = scalar_lea.vmem (!%p1279_p4), [#allocation10], %s1683_s7 }
  0x46   : > { %v1726_v14 = vld [vmem:[%s2571_s3 + $0x1a0] sm:$0xff]  ;;  %v1731_v15 = vld [vmem:[%s2571_s3 + $0x1a8] sm:$0xff]  ;;  %v1932_v50 = vld [vmem:[%s2571_s3 + $0x1f0] sm:$0xff] }
  0x47   : > { %v1738_v16 = vld [vmem:[%s2571_s3 + $0x180] sm:$0xff]  ;;  %v1743_v17 = vld [vmem:[%s2571_s3 + $0x188] sm:$0xff]  ;;  %v1937_v51 = vld [vmem:[%s2571_s3 + $0x1f8] sm:$0xff] }
  0x48   : > { %v1748_v18 = vld [vmem:[%s1685_s8] sm:$0xff]  ;;  %v1753_v19 = vld [vmem:[%s2571_s3 + $0x160] sm:$0xff]  ;;  %v1948_v52 = vld [vmem:[%s2571_s3 + $0x1d0] sm:$0xff] }
  0x49   : > { %v1758_v20 = vld [vmem:[%s2571_s3 + $0x168] sm:$0xff]  ;;  %v1769_v21 = vld [vmem:[%s2571_s3 + $0x140] sm:$0xff]  ;;  %v1953_v53 = vld [vmem:[%s2571_s3 + $0x1d8] sm:$0xff] }
  0x4a   : > { %v334_v6 = vld [vmem:[%s2615_s1 + $0x30] sm:$0xff]  ;;  %v335_v7 = vld [vmem:[%s2615_s1 + $0x38] sm:$0xff]  ;;  %v1774_v22 = vld [vmem:[%s2571_s3 + $0x148] sm:$0xff] }
  0x4b   : > { %v330_v8 = vld [vmem:[%s2615_s1 + $0x10] sm:$0xff]  ;;  %431 = vmatpush.msra.mxu2 %v334_v6  ;;  %460 = vmatpush.msra.mxu3 %v335_v7  ;;  %v331_v9 = vld [vmem:[%s2615_s1 + $0x18] sm:$0xff]  ;;  %v1781_v23 = vld [vmem:[%s2571_s3 + $0x120] sm:$0xff] }
  0x4c   : > { %v1786_v24 = vld [vmem:[%s2571_s3 + $0x128] sm:$0xff]  ;;  %v1796_v26 = vld [vmem:[%s2571_s3 + $0x100] sm:$0xff]  ;;  %v1960_v54 = vld [vmem:[%s2571_s3 + $0x1b0] sm:$0xff] }
  0x4d   : > { %432 = vmatpush.msra.mxu2 %v330_v8  ;;  %461 = vmatpush.msra.mxu3 %v331_v9  ;;  %v1801_v27 = vld [vmem:[%s2571_s3 + $0x108] sm:$0xff]  ;;  %v1808_v28 = vld [vmem:[%s2571_s3 + $0xe0] sm:$0xff]  ;;  %v1965_v55 = vld [vmem:[%s2571_s3 + $0x1b8] sm:$0xff] }
  0x4e   : > { %1271 = vmatmul.msk.f32.vlgmr.msra.gmra.mxu2 %vm346_vm0, %v1748_v18  ;;  %1275 = vmatmul.msk.f32.vlgmr.msra.gmra.mxu3 %vm346_vm0, %v1748_v18  ;;  %2616 = vst [vmem:[#allocation15_spill] sm:$0xff] %v1801_v27  ;;  %v1813_v29 = vld [vmem:[%s2571_s3 + $0xe8] sm:$0xff]  ;;  %v1824_v30 = vld [vmem:[%s2571_s3 + $0xc0] sm:$0xff]  ;;  %v1975_v56 = vld [vmem:[%s2571_s3 + $0x190] sm:$0xff] }
  0x4f   : > { %561 = vmatpush.msrb.mxu2 %v1704_v10  ;;  %581 = vmatpush.msrb.mxu3 %v1709_v11  ;;  %2617 = vst [vmem:[#allocation16_spill] sm:$0xff] %v1808_v28  ;;  %v1829_v31 = vld [vmem:[%s2571_s3 + $0xc8] sm:$0xff]  ;;  %v1836_v32 = vld [vmem:[%s2571_s3 + $0xa0] sm:$0xff]  ;;  %v1980_v57 = vld [vmem:[%s2571_s3 + $0x198] sm:$0xff] }
  0x50   : > { %2618 = vst [vmem:[#allocation17_spill] sm:$0xff] %v1836_v32  ;;  %v1841_v33 = vld [vmem:[%s2571_s3 + $0xa8] sm:$0xff]  ;;  %v1851_v35 = vld [vmem:[%s2571_s3 + $0x80] sm:$0xff]  ;;  %v1991_v59 = vld [vmem:[%s2571_s3 + $0x170] sm:$0xff] }
  0x51   : > { %562 = vmatpush.msrb.mxu2 %v1714_v12  ;;  %582 = vmatpush.msrb.mxu3 %v1719_v13  ;;  %2619 = vst [vmem:[#allocation18_spill] sm:$0xff] %v1841_v33  ;;  %v1856_v36 = vld [vmem:[%s2571_s3 + $0x88] sm:$0xff]  ;;  %v1863_v37 = vld [vmem:[%s2571_s3 + $0x60] sm:$0xff]  ;;  %v1996_v60 = vld [vmem:[%s2571_s3 + $0x178] sm:$0xff] }
  0x52   : > { %2620 = vst [vmem:[#allocation19_spill] sm:$0xff] %v1851_v35  ;;  %v1868_v38 = vld [vmem:[%s2571_s3 + $0x68] sm:$0xff]  ;;  %v332_v39 = vld [vmem:[%s2615_s1 + $0x20] sm:$0xff]  ;;  %v2005_v61 = vld [vmem:[%s2571_s3 + $0x150] sm:$0xff] }
  0x53   : > { %563 = vmatpush.msrb.mxu2 %v1726_v14  ;;  %583 = vmatpush.msrb.mxu3 %v1731_v15  ;;  %2621 = vst [vmem:[#allocation20_spill] sm:$0xff] %v1856_v36  ;;  %v1882_v40 = vld [vmem:[%s2571_s3 + $0x40] sm:$0xff]  ;;  %v1887_v41 = vld [vmem:[%s2571_s3 + $0x48] sm:$0xff]  ;;  %v2010_v62 = vld [vmem:[%s2571_s3 + $0x158] sm:$0xff] }
  0x54   : > { %2622 = vst [vmem:[#allocation21_spill] sm:$0xff] %v1863_v37  ;;  %373 = vmatpush.msra.mxu0 %v332_v39  ;;  %v328_v42 = vld [vmem:[%s2615_s1] sm:$0xff]  ;;  %v333_v43 = vld [vmem:[%s2615_s1 + $0x28] sm:$0xff]  ;;  %v2019_v63 = vld [vmem:[%s2571_s3 + $0x130] sm:$0xff] }
  0x55   : > { %564 = vmatpush.msrb.mxu2 %v1738_v16  ;;  %584 = vmatpush.msrb.mxu3 %v1743_v17  ;;  %2623 = vst [vmem:[#allocation22_spill] sm:$0xff] %v1868_v38  ;;  %v1900_v44 = vld [vmem:[%s2571_s3 + $0x20] sm:$0xff]  ;;  %v1905_v45 = vld [vmem:[%s2571_s3 + $0x28] sm:$0xff]  ;;  %v2024_v0 = vld [vmem:[%s2571_s3 + $0x138] sm:$0xff] }
  0x56   : > { %1272 = vmatmul.msk.f32.gmra.mxu2 %vm346_vm0, %v1791_v25  ;;  %1276 = vmatmul.msk.f32.gmra.mxu3 %vm346_vm0, %v1791_v25  ;;  %2624 = vst [vmem:[#allocation23_spill] sm:$0xff] %v1882_v40  ;;  %v329_v46 = vld [vmem:[%s2615_s1 + $0x8] sm:$0xff]  ;;  %v1913_v47 = vld [vmem:[%s1685_s8 + $0x18] sm:$0xff]  ;;  %v2033_v1 = vld [vmem:[%s2571_s3 + $0x110] sm:$0xff] }
  0x57   : > { %565 = vmatpush.msrb.mxu2 %v1753_v19  ;;  %585 = vmatpush.msrb.mxu3 %v1758_v20  ;;  %2625 = vst [vmem:[#allocation24_spill] sm:$0xff] %v1887_v41  ;;  %v1918_v48 = vld [vmem:[%s2571_s3] sm:$0xff]  ;;  %v1923_v49 = vld [vmem:[%s2571_s3 + $0x8] sm:$0xff]  ;;  %v2038_v2 = vld [vmem:[%s2571_s3 + $0x118] sm:$0xff] }
  0x58   : > { %2626 = vst [vmem:[#allocation25_spill] sm:$0xff] %v1900_v44  ;;  %374 = vmatpush.msra.mxu0 %v328_v42  ;;  %402 = vmatpush.msra.mxu1 %v333_v43  ;;  %v1986_v58 = vld [vmem:[#allocation2] sm:$0xff]  ;;  %v2048_v3 = vld [vmem:[%s2571_s3 + $0xf0] sm:$0xff]  ;;  %v2053_v4 = vld [vmem:[%s2571_s3 + $0xf8] sm:$0xff] }
  0x59   : > { %566 = vmatpush.msrb.mxu2 %v1769_v21  ;;  %586 = vmatpush.msrb.mxu3 %v1774_v22  ;;  %2627 = vst [vmem:[#allocation26_spill] sm:$0xff] %v1905_v45  ;;  %v2063_v5 = vld [vmem:[%s2571_s3 + $0xd0] sm:$0xff]  ;;  %v2068_v6 = vld [vmem:[%s2571_s3 + $0xd8] sm:$0xff] }
  0x5a   : > { %2628 = vst [vmem:[#allocation27_spill] sm:$0xff] %v1918_v48  ;;  %1263 = vmatmul.msk.f32.vlgmr.msra.gmra.mxu0 %vm346_vm0, %v1748_v18  ;;  %403 = vmatpush.msra.mxu1 %v329_v46  ;;  %v2077_v7 = vld [vmem:[%s2571_s3 + $0xb0] sm:$0xff]  ;;  %v2082_v8 = vld [vmem:[%s2571_s3 + $0xb8] sm:$0xff] }
  0x5b   : > { %567 = vmatpush.msrb.mxu2 %v1781_v23  ;;  %587 = vmatpush.msrb.mxu3 %v1786_v24  ;;  %2629 = vst [vmem:[#allocation28_spill] sm:$0xff] %v1923_v49  ;;  %v2091_v9 = vld [vmem:[%s2571_s3 + $0x90] sm:$0xff]  ;;  %v2110_v39 = vld [vmem:[%s2571_s3 + $0x78] sm:$0xff] }
  0x5c   : > { %1267 = vmatmul.msk.f32.vlgmr.msra.gmra.mxu1 %vm346_vm0, %v1748_v18  ;;  %669 = vmatpush.msrb.mxu0 %v1704_v10  ;;  %2630 = vst [vmem:[#allocation29_spill] sm:$0xff] %v2068_v6  ;;  %v2096_v18 = vld [vmem:[%s2571_s3 + $0x98] sm:$0xff]  ;;  %v2120_v42 = vld [vmem:[%s2571_s3 + $0x50] sm:$0xff] }
  0x5d   : > { %568 = vmatpush.msrb.mxu2 %v1796_v26  ;;  %588 = vmatpush.msrb.mxu3 %v1801_v27  ;;  %2631 = vst [vmem:[#allocation30_spill] sm:$0xff] %v2077_v7  ;;  %v2125_v43 = vld [vmem:[%s2571_s3 + $0x58] sm:$0xff]  ;;  %v2135_v46 = vld [vmem:[%s2571_s3 + $0x30] sm:$0xff] }
  0x5e   : > { %1273 = vmatmul.msk.f32.gmra.mxu2 %vm346_vm0, %v1846_v34  ;;  %1277 = vmatmul.msk.f32.gmra.mxu3 %vm346_vm0, %v1846_v34  ;;  %2632 = vst [vmem:[#allocation31_spill] sm:$0xff] %v2082_v8 }
  0x5f   : > { %569 = vmatpush.msrb.mxu2 %v1808_v28  ;;  %589 = vmatpush.msrb.mxu3 %v1813_v29  ;;  %2633 = vst [vmem:[#allocation32_spill] sm:$0xff] %v2091_v9 }
  0x60   : > { %689 = vmatpush.msrb.mxu1 %v1709_v11  ;;  %670 = vmatpush.msrb.mxu0 %v1714_v12  ;;  %2634 = vst [vmem:[#allocation33_spill] sm:$0xff] %v2096_v18 }
  0x61   : > { %570 = vmatpush.msrb.mxu2 %v1824_v30  ;;  %590 = vmatpush.msrb.mxu3 %v1829_v31  ;;  %2636 = vst [vmem:[#allocation35_spill] sm:$0xff] %v2110_v39 }
  0x62   : > { %690 = vmatpush.msrb.mxu1 %v1719_v13  ;;  %671 = vmatpush.msrb.mxu0 %v1726_v14  ;;  %2637 = vst [vmem:[#allocation36_spill] sm:$0xff] %v2120_v42 }
  0x63   : > { %571 = vmatpush.msrb.mxu2 %v1836_v32  ;;  %591 = vmatpush.msrb.mxu3 %v1841_v33  ;;  %2638 = vst [vmem:[#allocation37_spill] sm:$0xff] %v2125_v43 }
  0x64   : > { %691 = vmatpush.msrb.mxu1 %v1731_v15  ;;  %672 = vmatpush.msrb.mxu0 %v1738_v16  ;;  %2639 = vst [vmem:[#allocation38_spill] sm:$0xff] %v2135_v46 }
  0x65   : > { %572 = vmatpush.msrb.mxu2 %v1851_v35  ;;  %592 = vmatpush.msrb.mxu3 %v1856_v36 }
  0x66   : > { %1274 = vmatmul.msk.f32.gmra.mxu2 %vm346_vm0, %v1913_v47  ;;  %1278 = vmatmul.msk.f32.gmra.mxu3 %vm346_vm0, %v1913_v47 }
  0x67   : > { %573 = vmatpush.msrb.mxu2 %v1863_v37  ;;  %593 = vmatpush.msrb.mxu3 %v1868_v38 }
  0x68   : > { %692 = vmatpush.msrb.mxu1 %v1743_v17  ;;  %1264 = vmatmul.msk.f32.gmra.mxu0 %vm346_vm0, %v1791_v25 }
  0x69   : > { %574 = vmatpush.msrb.mxu2 %v1882_v40  ;;  %594 = vmatpush.msrb.mxu3 %v1887_v41 }
  0x6a   : > { %1268 = vmatmul.msk.f32.gmra.mxu1 %vm346_vm0, %v1791_v25  ;;  %673 = vmatpush.msrb.mxu0 %v1753_v19  ;;  %v2105_v25 = vld [vmem:[%s2571_s3 + $0x70] sm:$0xff] }
  0x6b   : > { %575 = vmatpush.msrb.mxu2 %v1900_v44  ;;  %595 = vmatpush.msrb.mxu3 %v1905_v45  ;;  %2635 = vst [vmem:[#allocation34_spill] sm:$0xff] %v2105_v25 }
  0x6c   : > { %693 = vmatpush.msrb.mxu1 %v1758_v20  ;;  %674 = vmatpush.msrb.mxu0 %v1769_v21 }
  0x6d   : > { %576 = vmatpush.msrb.mxu2 %v1918_v48  ;;  %596 = vmatpush.msrb.mxu3 %v1923_v49 }
  0x6e   : > { %577 = vmatmul.f32.vlgmr.msrb.gmra.mxu2 %v1986_v58  ;;  %597 = vmatmul.f32.vlgmr.msrb.gmra.mxu3 %v1986_v58 }
  0x6f   : > { %601 = vmatpush.msra.mxu2 %v1932_v50  ;;  %621 = vmatpush.msra.mxu3 %v1937_v51 }
  0x70   : > { %694 = vmatpush.msrb.mxu1 %v1774_v22  ;;  %675 = vmatpush.msrb.mxu0 %v1781_v23 }
  0x71   : > { %602 = vmatpush.msra.mxu2 %v1948_v52  ;;  %622 = vmatpush.msra.mxu3 %v1953_v53 }
  0x72   : > { %695 = vmatpush.msrb.mxu1 %v1786_v24  ;;  %676 = vmatpush.msrb.mxu0 %v1796_v26 }
  0x73   : > { %603 = vmatpush.msra.mxu2 %v1960_v54  ;;  %623 = vmatpush.msra.mxu3 %v1965_v55 }
  0x74   : > { %696 = vmatpush.msrb.mxu1 %v1801_v27  ;;  %1265 = vmatmul.msk.f32.gmra.mxu0 %vm346_vm0, %v1846_v34  ;;  %v2140_v27 = vld [vmem:[%s2571_s3 + $0x38] sm:$0xff] }
  0x75   : > { %604 = vmatpush.msra.mxu2 %v1975_v56  ;;  %624 = vmatpush.msra.mxu3 %v1980_v57  ;;  %2640 = vst [vmem:[#allocation39_spill] sm:$0xff] %v2140_v27 }
  0x76   : > { %1269 = vmatmul.msk.f32.gmra.mxu1 %vm346_vm0, %v1846_v34  ;;  %677 = vmatpush.msrb.mxu0 %v1808_v28  ;;  %v2149_v34 = vld [vmem:[%s2571_s3 + $0x10] sm:$0xff]  ;;  %v2154_v28 = vld [vmem:[%s2571_s3 + $0x18] sm:$0xff] }
  0x77   : > { %605 = vmatpush.msra.mxu2 %v1991_v59  ;;  %625 = vmatpush.msra.mxu3 %v1996_v60  ;;  %2641 = vst [vmem:[#allocation40_spill] sm:$0xff] %v2149_v34 }
  0x78   : > { %697 = vmatpush.msrb.mxu1 %v1813_v29  ;;  %678 = vmatpush.msrb.mxu0 %v1824_v30  ;;  %2642 = vst [vmem:[#allocation41_spill] sm:$0xff] %v2154_v28 }
  0x79   : > { %606 = vmatpush.msra.mxu2 %v2005_v61  ;;  %626 = vmatpush.msra.mxu3 %v2010_v62 }
  0x7a   : > { %698 = vmatpush.msrb.mxu1 %v1829_v31  ;;  %679 = vmatpush.msrb.mxu0 %v1836_v32 }
  0x7b   : > { %607 = vmatpush.msra.mxu2 %v2019_v63  ;;  %627 = vmatpush.msra.mxu3 %v2024_v0 }
  0x7c   : > { %699 = vmatpush.msrb.mxu1 %v1841_v33  ;;  %680 = vmatpush.msrb.mxu0 %v1851_v35 }
  0x7d   : > { %608 = vmatpush.msra.mxu2 %v2033_v1  ;;  %628 = vmatpush.msra.mxu3 %v2038_v2 }
  0x7e   : > { %700 = vmatpush.msrb.mxu1 %v1856_v36  ;;  %1266 = vmatmul.msk.f32.gmra.mxu0 %vm346_vm0, %v1913_v47 }
  0x7f   : > { %609 = vmatpush.msra.mxu2 %v2048_v3  ;;  %629 = vmatpush.msra.mxu3 %v2053_v4 }
  0x80   : > { %1270 = vmatmul.msk.f32.gmra.mxu1 %vm346_vm0, %v1913_v47  ;;  %681 = vmatpush.msrb.mxu0 %v1863_v37  ;;  %v2643_v47 = vld [vmem:[#allocation15_spill] sm:$0xff] }
  0x81   : > { %610 = vmatpush.msra.mxu2 %v2063_v5  ;;  %630 = vmatpush.msra.mxu3 %v2068_v6 }
  0x82   : > { %701 = vmatpush.msrb.mxu1 %v1868_v38  ;;  %682 = vmatpush.msrb.mxu0 %v1882_v40 }
  0x83   : > { %611 = vmatpush.msra.mxu2 %v2077_v7  ;;  %631 = vmatpush.msra.mxu3 %v2082_v8 }
  0x84   : > { %702 = vmatpush.msrb.mxu1 %v1887_v41  ;;  %683 = vmatpush.msrb.mxu0 %v1900_v44 }
  0x85   : > { %612 = vmatpush.msra.mxu2 %v2091_v9  ;;  %632 = vmatpush.msra.mxu3 %v2096_v18 }
  0x86   : > { %703 = vmatpush.msrb.mxu1 %v1905_v45  ;;  %684 = vmatpush.msrb.mxu0 %v1918_v48 }
  0x87   : > { %613 = vmatpush.msra.mxu2 %v2105_v25  ;;  %633 = vmatpush.msra.mxu3 %v2110_v39 }
  0x88   : > { %704 = vmatpush.msrb.mxu1 %v1923_v49  ;;  %778 = vmatpush.msra.mxu0 %v1704_v10 }
  0x89   : > { %614 = vmatpush.msra.mxu2 %v2120_v42  ;;  %634 = vmatpush.msra.mxu3 %v2125_v43 }
  0x8a   : > { %798 = vmatpush.msra.mxu1 %v1709_v11  ;;  %779 = vmatpush.msra.mxu0 %v1714_v12 }
  0x8b   : > { %615 = vmatpush.msra.mxu2 %v2135_v46  ;;  %635 = vmatpush.msra.mxu3 %v2140_v27 }
  0x8c   : > { %799 = vmatpush.msra.mxu1 %v1719_v13  ;;  %780 = vmatpush.msra.mxu0 %v1726_v14 }
  0x8d   : > { %616 = vmatpush.msra.mxu2 %v2149_v34  ;;  %636 = vmatpush.msra.mxu3 %v2154_v28 }
  0x8e   : > { %617 = vmatmul.f32.vlgmr.msra.gmra.mxu2 %v1986_v58  ;;  %637 = vmatmul.f32.vlgmr.msra.gmra.mxu3 %v1986_v58  ;;  %v2644_v58 = vld [vmem:[#allocation16_spill] sm:$0xff] }
  0x8f   : > { %709 = vmatpush.msrb.mxu2 %v1932_v50  ;;  %729 = vmatpush.msrb.mxu3 %v1937_v51 }
  0x90   : > { %800 = vmatpush.msra.mxu1 %v1731_v15  ;;  %781 = vmatpush.msra.mxu0 %v1738_v16 }
  0x91   : > { %710 = vmatpush.msrb.mxu2 %v1948_v52  ;;  %730 = vmatpush.msrb.mxu3 %v1953_v53 }
  0x92   : > { %801 = vmatpush.msra.mxu1 %v1743_v17  ;;  %782 = vmatpush.msra.mxu0 %v1753_v19 }
  0x93   : > { %711 = vmatpush.msrb.mxu2 %v1960_v54  ;;  %731 = vmatpush.msrb.mxu3 %v1965_v55 }
  0x94   : > { %802 = vmatpush.msra.mxu1 %v1758_v20  ;;  %783 = vmatpush.msra.mxu0 %v1769_v21 }
  0x95   : > { %712 = vmatpush.msrb.mxu2 %v1975_v56  ;;  %732 = vmatpush.msrb.mxu3 %v1980_v57 }
  0x96   : > { %803 = vmatpush.msra.mxu1 %v1774_v22  ;;  %784 = vmatpush.msra.mxu0 %v1781_v23 }
  0x97   : > { %713 = vmatpush.msrb.mxu2 %v1991_v59  ;;  %733 = vmatpush.msrb.mxu3 %v1996_v60 }
  0x98   : > { %804 = vmatpush.msra.mxu1 %v1786_v24  ;;  %785 = vmatpush.msra.mxu0 %v1796_v26 }
  0x99   : > { %714 = vmatpush.msrb.mxu2 %v2005_v61  ;;  %734 = vmatpush.msrb.mxu3 %v2010_v62 }
  0x9a   : > { %805 = vmatpush.msra.mxu1 %v2643_v47  ;;  %786 = vmatpush.msra.mxu0 %v2644_v58 }
  0x9b   : > { %715 = vmatpush.msrb.mxu2 %v2019_v63  ;;  %735 = vmatpush.msrb.mxu3 %v2024_v0 }
  0x9c   : > { %806 = vmatpush.msra.mxu1 %v1813_v29  ;;  %787 = vmatpush.msra.mxu0 %v1824_v30 }
  0x9d   : > { %716 = vmatpush.msrb.mxu2 %v2033_v1  ;;  %736 = vmatpush.msrb.mxu3 %v2038_v2 }
  0x9e   : > { %807 = vmatpush.msra.mxu1 %v1829_v31  ;;  %788 = vmatpush.msra.mxu0 %v1836_v32 }
  0x9f   : > { %717 = vmatpush.msrb.mxu2 %v2048_v3  ;;  %737 = vmatpush.msrb.mxu3 %v2053_v4 }
  0xa0   : > { %808 = vmatpush.msra.mxu1 %v1841_v33  ;;  %789 = vmatpush.msra.mxu0 %v1851_v35 }
  0xa1   : > { %718 = vmatpush.msrb.mxu2 %v2063_v5  ;;  %738 = vmatpush.msrb.mxu3 %v2068_v6 }
  0xa2   : > { %809 = vmatpush.msra.mxu1 %v1856_v36  ;;  %790 = vmatpush.msra.mxu0 %v1863_v37 }
  0xa3   : > { %719 = vmatpush.msrb.mxu2 %v2077_v7  ;;  %739 = vmatpush.msrb.mxu3 %v2082_v8 }
  0xa4   : > { %810 = vmatpush.msra.mxu1 %v1868_v38  ;;  %791 = vmatpush.msra.mxu0 %v1882_v40 }
  0xa5   : > { %720 = vmatpush.msrb.mxu2 %v2091_v9  ;;  %740 = vmatpush.msrb.mxu3 %v2096_v18 }
  0xa6   : > { %811 = vmatpush.msra.mxu1 %v1887_v41  ;;  %792 = vmatpush.msra.mxu0 %v1900_v44 }
  0xa7   : > { %721 = vmatpush.msrb.mxu2 %v2105_v25  ;;  %741 = vmatpush.msrb.mxu3 %v2110_v39 }
  0xa8   : > { %812 = vmatpush.msra.mxu1 %v1905_v45  ;;  %793 = vmatpush.msra.mxu0 %v1918_v48  ;;  %v336_v45 = vld [vmem:[%s2570_s2] sm:$0xf] }
  0xa9   : > { %722 = vmatpush.msrb.mxu2 %v2120_v42  ;;  %742 = vmatpush.msrb.mxu3 %v2125_v43  ;;  %v340_v44 = vperm.slane %v336_v45, 2  ;;  %v341_v41 = vperm.slane %v336_v45, 3  ;;  %v2292_v35 = vperm.slane %v336_v45, 0 }
  0xaa   : > { %813 = vmatpush.msra.mxu1 %v1923_v49 }
  0xab   : > { %723 = vmatpush.msrb.mxu2 %v2135_v46  ;;  %743 = vmatpush.msrb.mxu3 %v2140_v27 }
  0xad   : > { %724 = vmatpush.msrb.mxu2 %v2149_v34  ;;  %744 = vmatpush.msrb.mxu3 %v2154_v28 }
  0xaf   : > { %818 = vmatpush.msra.mxu2 %v1932_v50  ;;  %838 = vmatpush.msra.mxu3 %v1937_v51 }
  0xb1   : > { %819 = vmatpush.msra.mxu2 %v1948_v52  ;;  %839 = vmatpush.msra.mxu3 %v1953_v53 }
  0xb3   : > { %820 = vmatpush.msra.mxu2 %v1960_v54  ;;  %840 = vmatpush.msra.mxu3 %v1965_v55 }
  0xb5   : > { %821 = vmatpush.msra.mxu2 %v1975_v56  ;;  %841 = vmatpush.msra.mxu3 %v1980_v57 }
  0xb7   : > { %822 = vmatpush.msra.mxu2 %v1991_v59  ;;  %842 = vmatpush.msra.mxu3 %v1996_v60 }
  0xb9   : > { %823 = vmatpush.msra.mxu2 %v2005_v61  ;;  %843 = vmatpush.msra.mxu3 %v2010_v62 }
  0xbb   : > { %824 = vmatpush.msra.mxu2 %v2019_v63  ;;  %844 = vmatpush.msra.mxu3 %v2024_v0 }
  0xbd   : > { %825 = vmatpush.msra.mxu2 %v2033_v1  ;;  %845 = vmatpush.msra.mxu3 %v2038_v2 }
  0xbf   : > { %826 = vmatpush.msra.mxu2 %v2048_v3  ;;  %846 = vmatpush.msra.mxu3 %v2053_v4 }
  0xc1   : > { %827 = vmatpush.msra.mxu2 %v2063_v5  ;;  %847 = vmatpush.msra.mxu3 %v2068_v6 }
  0xc3   : > { %828 = vmatpush.msra.mxu2 %v2077_v7  ;;  %848 = vmatpush.msra.mxu3 %v2082_v8 }
  0xc5   : > { %829 = vmatpush.msra.mxu2 %v2091_v9  ;;  %849 = vmatpush.msra.mxu3 %v2096_v18  ;;  %v2290_v9 = vperm.slane %v336_v45, 1 }
  0xc7   : > { %830 = vmatpush.msra.mxu2 %v2105_v25  ;;  %850 = vmatpush.msra.mxu3 %v2110_v39 }
  0xc9   : > { %831 = vmatpush.msra.mxu2 %v2120_v42  ;;  %851 = vmatpush.msra.mxu3 %v2125_v43 }
  0xcb   : > { %832 = vmatpush.msra.mxu2 %v2135_v46  ;;  %852 = vmatpush.msra.mxu3 %v2140_v27 }
  0xcd   : > { %833 = vmatpush.msra.mxu2 %v2149_v34  ;;  %853 = vmatpush.msra.mxu3 %v2154_v28 }
  0xd1   : > { %v434_v49 = vpop.f32.mrf.mxu2  ;;  %v463_v48 = vpop.f32.mrf.mxu3 }
  0xd2   : > { %v435_v45 = vadd.f32 %v434_v49, %v340_v44 }
  0xd9   : > { %v437_v40 = vpop.f32.mrf.mxu2  ;;  %v466_v42 = vpop.f32.mrf.mxu3 }
  0xda   : > { %v2278_v39 = vadd.f32 %v437_v40, %v340_v44  ;;  %v2280_v43 = vadd.f32 %v466_v42, %v341_v41  ;;  %v405_v36 = vpop.f32.mrf.mxu1  ;;  %v376_v42 = vpop.f32.mrf.mxu0 }
  0xdb   : > { %v406_v40 = vadd.f32 %v405_v36, %v2290_v9 }
  0xdc   : > { %2645 = vst [vmem:[#allocation15_spill] sm:$0xff] %v2278_v39 }
  0xdd   : > { %2646 = vst [vmem:[#allocation16_spill] sm:$0xff] %v2280_v43 }
  0xe1   : > { %v440_v46 = vpop.f32.mrf.mxu2  ;;  %v469_v27 = vpop.f32.mrf.mxu3 }
  0xe2   : > { %v2282_v25 = vadd.f32 %v440_v46, %v340_v44  ;;  %v2284_v34 = vadd.f32 %v469_v27, %v341_v41  ;;  %v377_v46 = vadd.f32 %v376_v42, %v2292_v35 }
  0xe4   : > { %2647 = vst [vmem:[#allocation42_spill] sm:$0xff] %v2282_v25 }
  0xe5   : > { %2648 = vst [vmem:[#allocation43_spill] sm:$0xff] %v2284_v34 }
  0xe9   : > { %v443_v28 = vpop.f32.mrf.mxu2  ;;  %v472_v38 = vpop.f32.mrf.mxu3 }
  0xea   : > { %v2286_v37 = vadd.f32 %v443_v28, %v340_v44  ;;  %v2288_v18 = vadd.f32 %v472_v38, %v341_v41  ;;  %v2296_v28 = vpop.f32.mrf.mxu0  ;;  %v2298_v38 = vpop.f32.mrf.mxu1  ;;  %v556_v44 = vld [vmem:[#allocation3] sm:$0xff] }
  0xec   : > { %2649 = vst [vmem:[#allocation44_spill] sm:$0xff] %v2286_v37  ;;  %v464_v37 = vadd.f32 %v463_v48, %v341_v41 }
  0xed   : > { %2650 = vst [vmem:[#allocation45_spill] sm:$0xff] %v2288_v18 }
  0xf1   : > { %v598_v43 = vpop.f32.mrf.mxu3  ;;  %v578_v27 = vpop.f32.mrf.mxu2 }
  0xf2   : > { %v642_v25 = vadd.f32 %v598_v43, %v406_v40  ;;  %v641_v34 = vadd.f32 %v578_v27, %v377_v46  ;;  %v382_v43 = vpop.f32.mrf.mxu0 }
  0xf3   : > { %v411_v40 = vpop.f32.mrf.mxu1 }
  0xf4   : > { %v649_v39 = vmul.f32 0.5, %v642_v25  ;;  %v645_v8 = vmul.f32 0.5, %v641_v34  ;;  %v2301_v25 = vadd.f32 %v382_v43, %v2292_v35 }
  0xf6   : > { %1374 = vtanh.f32 %v649_v39  ;;  %v2304_v39 = vadd.f32 %v411_v40, %v2290_v9 }
  0xf7   : > { %1376 = vtanh.f32 %v645_v8 }
  0xfc   : > { %v1375_v18 = vpop.eup %1374 }
  0xfd   : > { %v651_v7 = vmul.f32 0.5, %v1375_v18  ;;  %v1377_v32 = vpop.eup %1376 }
  0xfe   : > { %v647_v8 = vmul.f32 0.5, %v1377_v32  ;;  %v2669_v32 = vld [vmem:[#allocation26_spill] sm:$0xff] }
  0xff   : > { %v652_v46 = vadd.f32 0.5, %v651_v7  ;;  %v2677_v7 = vld [vmem:[#allocation16_spill] sm:$0xff] }
 0x100   : > { %v648_v41 = vadd.f32 0.5, %v647_v8 }
 0x101   : > { %v658_v48 = vmul.f32 %v652_v46, %v556_v44 }
 0x111   : > { %v618_v36 = vpop.f32.mrf.mxu2  ;;  %v638_v33 = vpop.f32.mrf.mxu3 }
 0x112   : > { %v643_v6 = vadd.f32 %v618_v36, %v435_v45  ;;  %v644_v42 = vadd.f32 %v638_v33, %v464_v37 }
 0x114   : > { %1378 = vtanh.f32 %v643_v6  ;;  %v654_v34 = vmul.f32 0.5, %v644_v42 }
 0x116   : > { %1380 = vtanh.f32 %v654_v34 }
 0x11a   : > { %v1379_v49 = vpop.eup %1378 }
 0x11b   : > { %v659_v18 = vmul.f32 %v1379_v49, %v648_v41 }
 0x11c   : > { %v1381_v27 = vpop.eup %1380 }
 0x11d   : > { %v2306_v33 = vadd.f32 %v659_v18, %v658_v48  ;;  %v656_v37 = vmul.f32 0.5, %v1381_v27 }
 0x11f   : > { %1382 = vtanh.f32 %v2306_v33  ;;  %v657_v45 = vadd.f32 0.5, %v656_v37 }
 0x125   : > { %v1383_v36 = vpop.eup %1382 }
 0x126   : > { %v2309_v43 = vmul.f32 %v1383_v36, %v657_v45  ;;  %v1028_v36 = vld [vmem:[%s2572_s4 + $0xf8] sm:$0xff] }
 0x128   : > { %685 = vmatmul.f32.vlgmr.msrb.gmra.mxu0 %v2309_v43  ;;  %705 = vmatmul.f32.vlgmr.msrb.gmra.mxu1 %v2309_v43 }
 0x129   : > { %725 = vmatmul.f32.vlgmr.msrb.gmra.mxu2 %v2309_v43  ;;  %745 = vmatmul.f32.vlgmr.msrb.gmra.mxu3 %v2309_v43 }
 0x12a   : > { %887 = vmatpush.msrb.mxu0 %v1704_v10  ;;  %907 = vmatpush.msrb.mxu1 %v1709_v11  ;;  %v2651_v10 = vld [vmem:[#allocation29_spill] sm:$0xff] }
 0x12b   : > { %927 = vmatpush.msrb.mxu2 %v1932_v50  ;;  %947 = vmatpush.msrb.mxu3 %v1937_v51  ;;  %v2652_v11 = vld [vmem:[#allocation17_spill] sm:$0xff]  ;;  %v2670_v50 = vld [vmem:[#allocation38_spill] sm:$0xff]  ;;  %v2671_v51 = vld [vmem:[#allocation39_spill] sm:$0xff] }
 0x12c   : > { %888 = vmatpush.msrb.mxu0 %v1714_v12  ;;  %908 = vmatpush.msrb.mxu1 %v1719_v13  ;;  %v2653_v12 = vld [vmem:[#allocation18_spill] sm:$0xff] }
 0x12d   : > { %928 = vmatpush.msrb.mxu2 %v1948_v52  ;;  %948 = vmatpush.msrb.mxu3 %v1953_v53  ;;  %v2654_v13 = vld [vmem:[#allocation30_spill] sm:$0xff]  ;;  %v2672_v52 = vld [vmem:[#allocation27_spill] sm:$0xff]  ;;  %v2673_v53 = vld [vmem:[#allocation28_spill] sm:$0xff] }
 0x12e   : > { %889 = vmatpush.msrb.mxu0 %v1726_v14  ;;  %909 = vmatpush.msrb.mxu1 %v1731_v15  ;;  %v2655_v14 = vld [vmem:[#allocation31_spill] sm:$0xff] }
 0x12f   : > { %929 = vmatpush.msrb.mxu2 %v1960_v54  ;;  %949 = vmatpush.msrb.mxu3 %v1965_v55  ;;  %v2656_v15 = vld [vmem:[#allocation19_spill] sm:$0xff]  ;;  %v2674_v54 = vld [vmem:[#allocation40_spill] sm:$0xff]  ;;  %v2675_v55 = vld [vmem:[#allocation41_spill] sm:$0xff] }
 0x130   : > { %890 = vmatpush.msrb.mxu0 %v1738_v16  ;;  %910 = vmatpush.msrb.mxu1 %v1743_v17  ;;  %v2657_v16 = vld [vmem:[#allocation20_spill] sm:$0xff] }
 0x131   : > { %930 = vmatpush.msrb.mxu2 %v1975_v56  ;;  %950 = vmatpush.msrb.mxu3 %v1980_v57  ;;  %v2658_v17 = vld [vmem:[#allocation32_spill] sm:$0xff]  ;;  %v2379_v56 = vpop.f32.mrf.mxu0  ;;  %v2381_v57 = vpop.f32.mrf.mxu1 }
 0x132   : > { %891 = vmatpush.msrb.mxu0 %v1753_v19  ;;  %911 = vmatpush.msrb.mxu1 %v1758_v20  ;;  %v2659_v19 = vld [vmem:[#allocation33_spill] sm:$0xff] }
 0x133   : > { %931 = vmatpush.msrb.mxu2 %v1991_v59  ;;  %951 = vmatpush.msrb.mxu3 %v1996_v60  ;;  %v2660_v20 = vld [vmem:[#allocation21_spill] sm:$0xff]  ;;  %v380_v59 = vadd.f32 %v2296_v28, %v2292_v35  ;;  %v409_v60 = vadd.f32 %v2298_v38, %v2290_v9 }
 0x134   : > { %892 = vmatpush.msrb.mxu0 %v1769_v21  ;;  %912 = vmatpush.msrb.mxu1 %v1774_v22  ;;  %v2661_v21 = vld [vmem:[#allocation22_spill] sm:$0xff] }
 0x135   : > { %932 = vmatpush.msrb.mxu2 %v2005_v61  ;;  %952 = vmatpush.msrb.mxu3 %v2010_v62  ;;  %v2662_v22 = vld [vmem:[#allocation34_spill] sm:$0xff] }
 0x136   : > { %893 = vmatpush.msrb.mxu0 %v1781_v23  ;;  %913 = vmatpush.msrb.mxu1 %v1786_v24  ;;  %v2663_v23 = vld [vmem:[#allocation35_spill] sm:$0xff] }
 0x137   : > { %933 = vmatpush.msrb.mxu2 %v2019_v63  ;;  %953 = vmatpush.msrb.mxu3 %v2024_v0  ;;  %v2664_v24 = vld [vmem:[#allocation23_spill] sm:$0xff] }
 0x138   : > { %894 = vmatpush.msrb.mxu0 %v1796_v26  ;;  %914 = vmatpush.msrb.mxu1 %v2643_v47  ;;  %v2665_v26 = vld [vmem:[#allocation24_spill] sm:$0xff] }
 0x139   : > { %934 = vmatpush.msrb.mxu2 %v2033_v1  ;;  %954 = vmatpush.msrb.mxu3 %v2038_v2 }
 0x13a   : > { %895 = vmatpush.msrb.mxu0 %v2644_v58  ;;  %915 = vmatpush.msrb.mxu1 %v1813_v29  ;;  %v2666_v29 = vld [vmem:[#allocation36_spill] sm:$0xff] }
 0x13b   : > { %935 = vmatpush.msrb.mxu2 %v2048_v3  ;;  %955 = vmatpush.msrb.mxu3 %v2053_v4 }
 0x13c   : > { %896 = vmatpush.msrb.mxu0 %v1824_v30  ;;  %916 = vmatpush.msrb.mxu1 %v1829_v31  ;;  %v2667_v30 = vld [vmem:[#allocation37_spill] sm:$0xff] }
 0x13d   : > { %936 = vmatpush.msrb.mxu2 %v2063_v5  ;;  %956 = vmatpush.msrb.mxu3 %v2651_v10  ;;  %v2668_v31 = vld [vmem:[#allocation25_spill] sm:$0xff]  ;;  %v2676_v5 = vld [vmem:[#allocation15_spill] sm:$0xff]  ;;  %v1025_v10 = vld [vmem:[%s2572_s4 + $0xe0] sm:$0xff] }
 0x13e   : > { %897 = vmatpush.msrb.mxu0 %v2652_v11  ;;  %917 = vmatpush.msrb.mxu1 %v2653_v12  ;;  %v1026_v11 = vld [vmem:[%s2572_s4 + $0xe8] sm:$0xff]  ;;  %v1023_v12 = vld [vmem:[%s2572_s4 + $0xd0] sm:$0xff] }
 0x13f   : > { %937 = vmatpush.msrb.mxu2 %v2654_v13  ;;  %957 = vmatpush.msrb.mxu3 %v2655_v14  ;;  %v1024_v13 = vld [vmem:[%s2572_s4 + $0xd8] sm:$0xff]  ;;  %v1021_v14 = vld [vmem:[%s2572_s4 + $0xc0] sm:$0xff] }
 0x140   : > { %898 = vmatpush.msrb.mxu0 %v2656_v15  ;;  %918 = vmatpush.msrb.mxu1 %v2657_v16  ;;  %v1022_v15 = vld [vmem:[%s2572_s4 + $0xc8] sm:$0xff]  ;;  %v1019_v16 = vld [vmem:[%s2572_s4 + $0xb0] sm:$0xff] }
 0x141   : > { %938 = vmatpush.msrb.mxu2 %v2658_v17  ;;  %958 = vmatpush.msrb.mxu3 %v2659_v19  ;;  %v1020_v17 = vld [vmem:[%s2572_s4 + $0xb8] sm:$0xff]  ;;  %v1017_v19 = vld [vmem:[%s2572_s4 + $0xa0] sm:$0xff] }
 0x142   : > { %899 = vmatpush.msrb.mxu0 %v2660_v20  ;;  %919 = vmatpush.msrb.mxu1 %v2661_v21  ;;  %v1018_v20 = vld [vmem:[%s2572_s4 + $0xa8] sm:$0xff]  ;;  %v1015_v21 = vld [vmem:[%s2572_s4 + $0x90] sm:$0xff] }
 0x143   : > { %939 = vmatpush.msrb.mxu2 %v2662_v22  ;;  %959 = vmatpush.msrb.mxu3 %v2663_v23  ;;  %v1016_v22 = vld [vmem:[%s2572_s4 + $0x98] sm:$0xff]  ;;  %v1013_v23 = vld [vmem:[%s2572_s4 + $0x80] sm:$0xff] }
 0x144   : > { %900 = vmatpush.msrb.mxu0 %v2664_v24  ;;  %920 = vmatpush.msrb.mxu1 %v2665_v26  ;;  %v1014_v24 = vld [vmem:[%s2572_s4 + $0x88] sm:$0xff]  ;;  %v1011_v26 = vld [vmem:[%s2572_s4 + $0x70] sm:$0xff] }
 0x145   : > { %940 = vmatpush.msrb.mxu2 %v2666_v29  ;;  %960 = vmatpush.msrb.mxu3 %v2667_v30  ;;  %v1012_v29 = vld [vmem:[%s2572_s4 + $0x78] sm:$0xff]  ;;  %v1009_v30 = vld [vmem:[%s2572_s4 + $0x60] sm:$0xff] }
 0x146   : > { %901 = vmatpush.msrb.mxu0 %v2668_v31  ;;  %921 = vmatpush.msrb.mxu1 %v2669_v32  ;;  %v1010_v31 = vld [vmem:[%s2572_s4 + $0x68] sm:$0xff]  ;;  %v1007_v32 = vld [vmem:[%s2572_s4 + $0x50] sm:$0xff] }
 0x147   : > { %941 = vmatpush.msrb.mxu2 %v2670_v50  ;;  %961 = vmatpush.msrb.mxu3 %v2671_v51  ;;  %v1008_v50 = vld [vmem:[%s2572_s4 + $0x58] sm:$0xff]  ;;  %v1005_v51 = vld [vmem:[%s2572_s4 + $0x40] sm:$0xff] }
 0x148   : > { %902 = vmatpush.msrb.mxu0 %v2672_v52  ;;  %922 = vmatpush.msrb.mxu1 %v2673_v53  ;;  %v1006_v52 = vld [vmem:[%s2572_s4 + $0x48] sm:$0xff]  ;;  %v1003_v53 = vld [vmem:[%s2572_s4 + $0x30] sm:$0xff] }
 0x149   : > { %942 = vmatpush.msrb.mxu2 %v2674_v54  ;;  %962 = vmatpush.msrb.mxu3 %v2675_v55  ;;  %v1004_v54 = vld [vmem:[%s2572_s4 + $0x38] sm:$0xff]  ;;  %v1001_v55 = vld [vmem:[%s2572_s4 + $0x20] sm:$0xff] }
 0x1a5   : > { %v686_v61 = vpop.f32.mrf.mxu0  ;;  %v706_v62 = vpop.f32.mrf.mxu1 }
 0x1a6   : > { %v749_v63 = vadd.f32 %v686_v61, %v380_v59  ;;  %v750_v0 = vadd.f32 %v706_v62, %v409_v60  ;;  %v1002_v61 = vld [vmem:[%s2572_s4 + $0x28] sm:$0xff] }
 0x1a8   : > { %v753_v1 = vmul.f32 0.5, %v749_v63  ;;  %v757_v2 = vmul.f32 0.5, %v750_v0  ;;  %v999_v0 = vld [vmem:[%s2572_s4 + $0x10] sm:$0xff] }
 0x1aa   : > { %1384 = vtanh.f32 %v753_v1  ;;  %v1000_v1 = vld [vmem:[%s2572_s4 + $0x18] sm:$0xff] }
 0x1ab   : > { %1386 = vtanh.f32 %v757_v2 }
 0x1ac   : > { %v726_v3 = vpop.f32.mrf.mxu2  ;;  %v746_v4 = vpop.f32.mrf.mxu3 }
 0x1ad   : > { %v751_v6 = vadd.f32 %v726_v3, %v2676_v5  ;;  %v752_v47 = vadd.f32 %v746_v4, %v2677_v7  ;;  %v997_v4 = vld [vmem:[%s2572_s4] sm:$0xff] }
 0x1af   : > { %1388 = vtanh.f32 %v751_v6  ;;  %v762_v58 = vmul.f32 0.5, %v752_v47  ;;  %v2678_v6 = vld [vmem:[#allocation42_spill] sm:$0xff]  ;;  %v2679_v47 = vld [vmem:[#allocation43_spill] sm:$0xff] }
 0x1b0   : > { %v1385_v28 = vpop.eup %1384 }
 0x1b1   : > { %v1387_v42 = vpop.eup %1386  ;;  %v755_v40 = vmul.f32 0.5, %v1385_v28  ;;  %1390 = vtanh.f32 %v762_v58 }
 0x1b2   : > { %v759_v38 = vmul.f32 0.5, %v1387_v42 }
 0x1b3   : > { %v756_v34 = vadd.f32 0.5, %v755_v40 }
 0x1b4   : > { %v760_v8 = vadd.f32 0.5, %v759_v38 }
 0x1b5   : > { %v1389_v46 = vpop.eup %1388 }
 0x1b6   : > { %v766_v44 = vmul.f32 %v760_v8, %v2306_v33  ;;  %v767_v41 = vmul.f32 %v1389_v46, %v756_v34  ;;  %v1027_v33 = vld [vmem:[%s2572_s4 + $0xf0] sm:$0xff] }
 0x1b7   : > { %v1391_v48 = vpop.eup %1390 }
 0x1b8   : > { %v2390_v49 = vadd.f32 %v767_v41, %v766_v44  ;;  %v764_v18 = vmul.f32 0.5, %v1391_v48 }
 0x1ba   : > { %1392 = vtanh.f32 %v2390_v49  ;;  %v765_v27 = vadd.f32 0.5, %v764_v18 }
 0x1c0   : > { %v1393_v37 = vpop.eup %1392 }
 0x1c1   : > { %v2393_v45 = vmul.f32 %v1393_v37, %v765_v27 }
 0x1c3   : > { %794 = vmatmul.f32.vlgmr.msra.gmra.mxu0 %v2393_v45  ;;  %814 = vmatmul.f32.vlgmr.msra.gmra.mxu1 %v2393_v45 }
 0x1c4   : > { %834 = vmatmul.f32.vlgmr.msra.gmra.mxu2 %v2393_v45  ;;  %854 = vmatmul.f32.vlgmr.msra.gmra.mxu3 %v2393_v45 }
 0x1c5   : > { %1029 = vmatpush.msra.mxu0 %v1027_v33  ;;  %1058 = vmatpush.msra.mxu1 %v1028_v36 }
 0x1c7   : > { %1030 = vmatpush.msra.mxu0 %v1025_v10  ;;  %1059 = vmatpush.msra.mxu1 %v1026_v11  ;;  %v415_v11 = vadd.f32 %v2381_v57, %v2290_v9 }
 0x1c9   : > { %1031 = vmatpush.msra.mxu0 %v1023_v12  ;;  %1060 = vmatpush.msra.mxu1 %v1024_v13 }
 0x1cb   : > { %1032 = vmatpush.msra.mxu0 %v1021_v14  ;;  %1061 = vmatpush.msra.mxu1 %v1022_v15 }
 0x1cd   : > { %1033 = vmatpush.msra.mxu0 %v1019_v16  ;;  %1062 = vmatpush.msra.mxu1 %v1020_v17 }
 0x1cf   : > { %1034 = vmatpush.msra.mxu0 %v1017_v19  ;;  %1063 = vmatpush.msra.mxu1 %v1018_v20  ;;  %v2680_v20 = vld [vmem:[#allocation44_spill] sm:$0xff] }
 0x1d1   : > { %1035 = vmatpush.msra.mxu0 %v1015_v21  ;;  %1064 = vmatpush.msra.mxu1 %v1016_v22  ;;  %v2681_v21 = vld [vmem:[#allocation45_spill] sm:$0xff] }
 0x1d3   : > { %1036 = vmatpush.msra.mxu0 %v1013_v23  ;;  %1065 = vmatpush.msra.mxu1 %v1014_v24 }
 0x1d5   : > { %1037 = vmatpush.msra.mxu0 %v1011_v26  ;;  %1066 = vmatpush.msra.mxu1 %v1012_v29 }
 0x1d7   : > { %1038 = vmatpush.msra.mxu0 %v1009_v30  ;;  %1067 = vmatpush.msra.mxu1 %v1010_v31 }
 0x1d9   : > { %1039 = vmatpush.msra.mxu0 %v1007_v32  ;;  %1068 = vmatpush.msra.mxu1 %v1008_v50 }
 0x1db   : > { %1040 = vmatpush.msra.mxu0 %v1005_v51  ;;  %1069 = vmatpush.msra.mxu1 %v1006_v52 }
 0x1dd   : > { %1041 = vmatpush.msra.mxu0 %v1003_v53  ;;  %1070 = vmatpush.msra.mxu1 %v1004_v54 }
 0x1df   : > { %1042 = vmatpush.msra.mxu0 %v1001_v55  ;;  %1071 = vmatpush.msra.mxu1 %v1002_v61 }
 0x1e1   : > { %1043 = vmatpush.msra.mxu0 %v999_v0  ;;  %1072 = vmatpush.msra.mxu1 %v1000_v1  ;;  %v1087_v1 = vld [vmem:[#allocation6] sm:$0xff] }
 0x1e3   : > { %1044 = vmatpush.msra.mxu0 %v997_v4 }
 0x240   : > { %v795_v59 = vpop.f32.mrf.mxu0  ;;  %v815_v60 = vpop.f32.mrf.mxu1 }
 0x241   : > { %v858_v62 = vadd.f32 %v795_v59, %v2301_v25  ;;  %v859_v63 = vadd.f32 %v815_v60, %v2304_v39  ;;  %v998_v25 = vld [vmem:[%s2572_s4 + $0x8] sm:$0xff] }
 0x242   : > { %1073 = vmatpush.msra.mxu1 %v998_v25 }
 0x243   : > { %v862_v2 = vmul.f32 0.5, %v858_v62  ;;  %v866_v3 = vmul.f32 0.5, %v859_v63 }
 0x245   : > { %1394 = vtanh.f32 %v862_v2 }
 0x246   : > { %1396 = vtanh.f32 %v866_v3 }
 0x247   : > { %v835_v39 = vpop.f32.mrf.mxu2  ;;  %v855_v5 = vpop.f32.mrf.mxu3 }
 0x248   : > { %v860_v7 = vadd.f32 %v835_v39, %v2678_v6  ;;  %v861_v58 = vadd.f32 %v855_v5, %v2679_v47 }
 0x24a   : > { %1398 = vtanh.f32 %v860_v7  ;;  %v871_v28 = vmul.f32 0.5, %v861_v58 }
 0x24b   : > { %v1395_v42 = vpop.eup %1394 }
 0x24c   : > { %v1397_v40 = vpop.eup %1396  ;;  %v864_v38 = vmul.f32 0.5, %v1395_v42  ;;  %1400 = vtanh.f32 %v871_v28 }
 0x24d   : > { %v868_v34 = vmul.f32 0.5, %v1397_v40 }
 0x24e   : > { %v865_v8 = vadd.f32 0.5, %v864_v38 }
 0x24f   : > { %v869_v46 = vadd.f32 0.5, %v868_v34 }
 0x250   : > { %v1399_v44 = vpop.eup %1398 }
 0x251   : > { %v875_v41 = vmul.f32 %v869_v46, %v2390_v49  ;;  %v876_v48 = vmul.f32 %v1399_v44, %v865_v8  ;;  %v386_v49 = vadd.f32 %v2379_v56, %v2292_v35 }
 0x252   : > { %v1401_v18 = vpop.eup %1400 }
 0x253   : > { %v877_v27 = vadd.f32 %v876_v48, %v875_v41  ;;  %v873_v37 = vmul.f32 0.5, %v1401_v18 }
 0x255   : > { %1402 = vtanh.f32 %v877_v27  ;;  %v874_v33 = vadd.f32 0.5, %v873_v37  ;;  %v1107_v37 = vld [vmem:[#allocation7] sm:$0xff] }
 0x25b   : > { %v1403_v36 = vpop.eup %1402 }
 0x25c   : > { %v879_v10 = vmul.f32 %v1403_v36, %v874_v33 }
 0x25e   : > { %903 = vmatmul.f32.vlgmr.msrb.gmra.mxu0 %v879_v10  ;;  %923 = vmatmul.f32.vlgmr.msrb.gmra.mxu1 %v879_v10 }
 0x25f   : > { %943 = vmatmul.f32.vlgmr.msrb.gmra.mxu2 %v879_v10  ;;  %963 = vmatmul.f32.vlgmr.msrb.gmra.mxu3 %v879_v10 }
 0x266   : > { %1045 = vmatmul.f32.vlgmr.msra.gmra.mxu0 %v2309_v43  ;;  %1074 = vmatmul.f32.vlgmr.msra.gmra.mxu1 %v2309_v43 }
 0x26e   : > { %1048 = vmatmul.f32.gmra.mxu0 %v2393_v45  ;;  %1077 = vmatmul.f32.gmra.mxu1 %v2393_v45 }
 0x276   : > { %1051 = vmatmul.f32.gmra.mxu0 %v879_v10  ;;  %1080 = vmatmul.f32.gmra.mxu1 %v879_v10 }
 0x2db   : > { %v904_v12 = vpop.f32.mrf.mxu0  ;;  %v924_v13 = vpop.f32.mrf.mxu1 }
 0x2dc   : > { %v967_v14 = vadd.f32 %v904_v12, %v386_v49  ;;  %v968_v15 = vadd.f32 %v924_v13, %v415_v11  ;;  %v1114_v11 = vld [vmem:[#allocation8] sm:$0xff] }
 0x2de   : > { %v971_v16 = vmul.f32 0.5, %v967_v14  ;;  %v975_v17 = vmul.f32 0.5, %v968_v15 }
 0x2e0   : > { %1404 = vtanh.f32 %v971_v16 }
 0x2e1   : > { %1406 = vtanh.f32 %v975_v17 }
 0x2e2   : > { %v944_v43 = vpop.f32.mrf.mxu2  ;;  %v964_v19 = vpop.f32.mrf.mxu3 }
 0x2e3   : > { %v969_v45 = vadd.f32 %v944_v43, %v2680_v20  ;;  %v970_v22 = vadd.f32 %v964_v19, %v2681_v21  ;;  %v1046_v55 = vpop.f32.mrf.mxu0  ;;  %v1075_v61 = vpop.f32.mrf.mxu1 }
 0x2e5   : > { %1408 = vtanh.f32 %v969_v45  ;;  %v980_v23 = vmul.f32 0.5, %v970_v22 }
 0x2e6   : > { %v1405_v35 = vpop.eup %1404 }
 0x2e7   : > { %v1407_v56 = vpop.eup %1406  ;;  %v973_v24 = vmul.f32 0.5, %v1405_v35  ;;  %1410 = vtanh.f32 %v980_v23 }
 0x2e8   : > { %v977_v9 = vmul.f32 0.5, %v1407_v56 }
 0x2e9   : > { %v974_v57 = vadd.f32 0.5, %v973_v24 }
 0x2ea   : > { %v978_v26 = vadd.f32 0.5, %v977_v9 }
 0x2eb   : > { %v1409_v29 = vpop.eup %1408  ;;  %v1049_v59 = vpop.f32.mrf.mxu0 }
 0x2ec   : > { %v984_v30 = vmul.f32 %v978_v26, %v877_v27  ;;  %v985_v31 = vmul.f32 %v1409_v29, %v974_v57  ;;  %v1088_v63 = vmax.f32 %v1046_v55, %v1049_v59  ;;  %v1078_v3 = vpop.f32.mrf.mxu1 }
 0x2ed   : > { %v1411_v32 = vpop.eup %1410 }
 0x2ee   : > { %v986_v50 = vadd.f32 %v985_v31, %v984_v30  ;;  %v982_v51 = vmul.f32 0.5, %v1411_v32 }
 0x2f0   : > { %992 = vst [vmem:[#allocation3] sm:$0xff] %v986_v50  ;;  %1412 = vtanh.f32 %v986_v50  ;;  %v983_v52 = vadd.f32 0.5, %v982_v51 }
 0x2f3   : > { %v1052_v60 = vpop.f32.mrf.mxu0 }
 0x2f4   : > { %v1081_v38 = vpop.f32.mrf.mxu1 }
 0x2f6   : > { %v1413_v53 = vpop.eup %1412 }
 0x2f7   : > { %v988_v54 = vmul.f32 %v1413_v53, %v983_v52 }
 0x2f9   : > { %991 = vst [vmem:[#allocation2] sm:$0xff] %v988_v54  ;;  %1054 = vmatmul.f32.gmra.mxu0 %v988_v54  ;;  %1083 = vmatmul.f32.gmra.mxu1 %v988_v54 }
 0x376   : > { %v1055_v62 = vpop.f32.mrf.mxu0  ;;  %v1084_v49 = vpop.f32.mrf.mxu1 }
 0x377   : > { %v1089_v0 = vmax.f32 %v1052_v60, %v1055_v62 }
 0x379   : > { %v1090_v2 = vmax.f32 %v1088_v63, %v1089_v0 }
 0x37b   : > { %v1091_v4 = vmax.f32 %v1087_v1, %v1090_v2 }
 0x37d   : > { %v1092_v25 = vsub.f32 %v1087_v1, %v1091_v4  ;;  %v1095_v39 = vsub.f32 %v1046_v55, %v1091_v4  ;;  %v1096_v5 = vsub.f32 %v1049_v59, %v1091_v4  ;;  %v1097_v6 = vsub.f32 %v1052_v60, %v1091_v4  ;;  %1125 = vst [vmem:[#allocation6] sm:$0xff] %v1091_v4 }
 0x37e   : > { %v1098_v7 = vsub.f32 %v1055_v62, %v1091_v4 }
 0x37f   : > { %v1093_v47 = vmul.f32 1.442695, %v1092_v25  ;;  %v1099_v58 = vmul.f32 1.442695, %v1095_v39  ;;  %v1101_v28 = vmul.f32 1.442695, %v1096_v5 }
 0x380   : > { %v1103_v42 = vmul.f32 1.442695, %v1097_v6  ;;  %v1105_v40 = vmul.f32 1.442695, %v1098_v7 }
 0x381   : > { %1414 = vpow2.f32 %v1093_v47 }
 0x382   : > { %1416 = vpow2.f32 %v1099_v58 }
 0x383   : > { %1418 = vpow2.f32 %v1101_v28 }
 0x384   : > { %1420 = vpow2.f32 %v1103_v42 }
 0x385   : > { %1422 = vpow2.f32 %v1105_v40 }
 0x387   : > { %v1415_v34 = vpop.eup %1414 }
 0x388   : > { %v1417_v8 = vpop.eup %1416  ;;  %v1108_v12 = vmul.f32 %v1415_v34, %v1107_v37  ;;  %v1115_v17 = vmul.f32 %v1415_v34, %v1114_v11 }
 0x389   : > { %v1419_v46 = vpop.eup %1418  ;;  %v1116_v44 = vmul.f32 %v1417_v8, %v1075_v61 }
 0x38a   : > { %v1421_v41 = vpop.eup %1420  ;;  %v1109_v48 = vadd.f32 %v1419_v46, %v1417_v8  ;;  %v1117_v18 = vmul.f32 %v1419_v46, %v1078_v3 }
 0x38b   : > { %v1423_v27 = vpop.eup %1422  ;;  %v1118_v36 = vmul.f32 %v1421_v41, %v1081_v38 }
 0x38c   : > { %v1110_v33 = vadd.f32 %v1421_v41, %v1109_v48  ;;  %v1120_v10 = vadd.f32 %v1117_v18, %v1116_v44  ;;  %v1119_v14 = vmul.f32 %v1423_v27, %v1084_v49 }
 0x38e   : > { %v1111_v13 = vadd.f32 %v1423_v27, %v1110_v33  ;;  %v1121_v15 = vadd.f32 %v1120_v10, %v1118_v36 }
 0x390   : > { %v1112_v16 = vadd.f32 %v1111_v13, %v1108_v12  ;;  %v1122_v43 = vadd.f32 %v1121_v15, %v1119_v14  ;;  %1129 = sbr.rel (%p1279_p4) target bundleno = 957 (0x3bd), region = 90 }
 0x392   : > { %1113 = vst [vmem:[#allocation7] sm:$0xff] %v1112_v16  ;;  %v1123_v19 = vadd.f32 %v1122_v43, %v1115_v17 }
 0x394   : > { %1124 = vst [vmem:[#allocation8] sm:$0xff] %v1123_v19 }
 0x395   : > { %v1424_v29 = vld [vmem:[%s2573_s5] ss:$0 sm:$0xff] }
 0x399   : > { %v1131_v20 = vld [vmem:[#allocation7] sm:$0xff] }
 0x39a   : > { %1425 = vrcp.f32 %v1131_v20  ;;  %v1143_v22 = vand.u32 2147483648, %v1131_v20  ;;  %vm1137_vm1 = vweird.f32 %v1131_v20  ;;  %v1141_v35 = vand.u32 2147483647, %v1131_v20 }
 0x39b   : > { %v1130_v57 = vld [vmem:[#allocation8] sm:$0xff] }
 0x39c   : > { %v1144_v24 = vor.u32 1.1754944e-38, %v1143_v22  ;;  %vm1142_vm4 = vcmp.eq.f32.partialorder %v1141_v35, 8.507059e+37 }
 0x3a0   : > { %v1426_v45 = vpop.eup %1425 }
 0x3a1   : > { %v1133_v21 = vmul.f32 %v1426_v45, %v1131_v20  ;;  %vm1138_vm2 = vweird.f32 %v1426_v45 }
 0x3a2   : > { %vm1139_vm3 = vmor %vm1137_vm1, %vm1138_vm2 }
 0x3a3   : > { %v1134_v23 = vsub.f32 1.0, %v1133_v21 }
 0x3a5   : > { %v1135_v56 = vmul.f32 %v1426_v45, %v1134_v23 }
 0x3a7   : > { %v1136_v9 = vadd.f32 %v1426_v45, %v1135_v56 }
 0x3a9   : > { %v1140_v26 = vsel %vm1139_vm3, %v1426_v45, %v1136_v9 }
 0x3aa   : > { %v1145_v30 = vsel %vm1142_vm4, %v1144_v24, %v1140_v26 }
 0x3ab   : > { %v1146_v31 = vmul.f32 %v1145_v30, %v1130_v57 }
 0x3ad   : > { %v1151_v32 = vadd.f32 %v1424_v29, %v1146_v31 }
 0x3af   : > { %v1152_v50 = vmul.f32 0.5, %v1151_v32 }
 0x3b1   : > { %1427 = vtanh.f32 %v1152_v50 }
 0x3b7   : > { %v1428_v51 = vpop.eup %1427 }
 0x3b8   : > { %v1154_v52 = vmul.f32 0.5, %v1428_v51 }
 0x3ba   : > { %v1155_v53 = vadd.f32 0.5, %v1154_v52 }
 0x3bc   : > { %1156 = vst [vmem:[%s2682_s13] sm:$0xff] %v1155_v53 }
 0x3bd PF: > { %s1281_s8 = sshll.u32 %s1527_s27, 3  ;;  %s2683_s14 = scalar_lea.vmem [#allocation10], %s1683_s7 }
 0x3be   : > { %s1168_s17 = scalar_lea.hbm %s2574_s6, %s1281_s8  ;;  %s1170_s10 = sshll.u32 %s2683_s14, 4  ;;  %s1171_s10 = int_to_ptr.vmem [resolvable:$true] %s1170_s10 }
 0x3bf   : > { %s1172_s11 = sshll.u32 %s1168_s17, 4  ;;  %s2684_s0 = sand.u32 1, %s1507_s22   ;;  %s1173_s11 = int_to_ptr.hbm [resolvable:$true] %s1172_s11 }
 0x3c0   : > { %s1158_s12 = scalar_lea.sflag [#allocation11], %s2684_s0  ;;  %s1443_s9 = sshra.s32 %s1173_s11, 4  ;;  %s1444_s9 = int_to_ptr.hbm [resolvable:$true] %s1443_s9 }
 0x3c1   : > { %s1445_s26 = scalar_lea.hbm %s1444_s9, 8  ;;  %s1449_s1 = scalar_lea.hbm %s2574_s6, 16 }
 0x3c2   : > { %p1446_p5 = scmp.ne.s32.totalorder %s1444_s9, %s1445_s26  ;;  %p1450_p9 = scmp.lt.s32.totalorder %s1444_s9, %s2574_s6 }
 0x3c3   : > { %p1451_p10 = scmp.lt.s32.totalorder %s1449_s1, %s1445_s26 }
 0x3c4   : > { %p1447_p6 = pnand %p1446_p5, %p1650_p7 }
 0x3c5   : > { %p1452_p11 = por %p1451_p10, %p1450_p9 }
 0x3c6   : > { %p1448_p8 = pneg %p1447_p6 }
 0x3c8   : > { %p1453_p13 = pnand %p1452_p11, %p1448_p8 }
 0x3ca   : > { %1456 = shalt.err (!%p1453_p13)
}
 0x3cb   : > { %1285 = dma.vmem_to_hbm [thread:$0]  (%p1650_p7), %s1171_s10, 128, %s1173_s11, %s1158_s12  }
 0x3cc PF: > { %p1291_p0 = scmp.ge.s32.totalorder %s1539_s30, 2  ;;  %s1184_s7 = sand.u32 1, %s1503_s21  }
 0x3cd   : > { %s1185_s16 = scalar_lea.sflag [#allocation11], %s1184_s7 }
 0x3ce   : > { %p1288_p1 = pnand %p1291_p0, %p1658_p12 }
 0x3d0   : > { %p1289_p2 = pneg %p1288_p1 }
 0x3d2   : > { %1498 = dma.done.wait (%p1289_p2), %s1185_s16, 128  }
 0x3d3   : > { %1500 = vsyncadd (%p1289_p2), %s1185_s16, 4294967168  ;;  %s19_s30 = sadd.s32 1, %s1539_s30   ;;  %s2685_s1 = sld [smem:[#allocation13_spill]] }
 0x3d4   : > { %p16_p3 = scmp.ge.s32.totalorder %s19_s30, 6   ;;  %s2686_s15 = sld [smem:[#allocation14_spill]] }
 0x3d5   : > { %s2687_s21 = smov %s1507_s22  ;;  %s2688_s22 = smov %s1511_s23 }
 0x3d6   : > { %s2689_s23 = smov %s1663_s19  ;;  %s2690_s24 = smov %s1519_s25 }
 0x3d7   : > { %s2691_s25 = smov %s1666_s20  ;;  %s2692_s26 = smov %s1531_s28 }
 0x3d8   : > { %s2693_s27 = smov %s1535_s29  ;;  %18 = sbr.rel (!%p16_p3) target bundleno = 9 (0x9), region = 136 }
 0x3d9   : > { %s2694_s28 = smov %s2685_s1 }
 0x3da   : > { %s2695_s29 = smov %s2686_s15 }
 0x3dd   :  { %1191 = vsyncpa [#allocation11], 1 }
 0x3de   :  { %1193 = vsyncpa [#allocation11 + $0x1], 1 }

</bundles_post_ra>
